<compile_context>
chip_gen: v5e
topology: v5e:2x2
jax: 0.10.0
libtpu: 0.0.40
codegen_flags: <defaults>
</compile_context>

<pallas_src>
import jax
import jax.numpy as jnp
from jax import lax
from jax.experimental import pallas as pl
from jax.experimental.pallas import tpu as pltpu

jax.config.update("jax_default_matmul_precision", "highest")

LANE = 128  # TPU lane width; used to pad the tiny FC output dim


def lstm_fc_kernel(tok_ref, fused_ref, whh_ref, wfc_ref, bfc_ref,
                   out_ref, gx_sc):
    """One-shot embedded-LSTM + FC.

    tok_ref   : (S*B, 1)  int32 token ids, time-major
    fused_ref : (V, 4H)   fused embedding + input projection (+ gate bias)
    whh_ref   : (H, 4H)   recurrent weight (transposed)
    wfc_ref   : (H, Opad) FC weight (transposed, zero-padded to 128 lanes)
    bfc_ref   : (1, Opad) FC bias (zero-padded)
    out_ref   : (B, Opad) logits (padded)
    gx_sc     : (S*B, 4H) VMEM scratch: per-timestep input contribution
    """
    B = out_ref.shape[0]
    H = whh_ref.shape[0]
    V = fused_ref.shape[0]
    SB = tok_ref.shape[0]
    S = SB // B

    # (2) In-kernel embedding/input-projection gather as a one-hot MXU matmul:
    #     row r of gx_sc = fused[token[r]] = x_r @ W_ih^T + b.
    vocab_iota = lax.broadcasted_iota(jnp.int32, (SB, V), 1)
    onehot = (tok_ref[...] == vocab_iota).astype(jnp.float32)      # (S*B, V)
    gx_sc[...] = jnp.dot(onehot, fused_ref[...],
                         preferred_element_type=jnp.float32)

    # Hoisted loop invariants.
    # TODO(synk): hold W_hh resident in MXU weight staging via
    #             pltpu.matmul_push_rhs/matmul_acc_lhs once a bundle dump
    #             confirms the RHS is re-pushed every unrolled step.
    w_hh = whh_ref[...]
    lane4h = lax.broadcasted_iota(jnp.int32, (B, 4 * H), 1)
    g_mask = (lane4h >= 2 * H) & (lane4h < 3 * H)   # tanh lanes (gate g)

    # (5) Sequential recurrence fully inside this invocation; h/c are loop
    #     carries. Gate math stays f32 (v5e-safe).
    def step(t, carry):
        h, c = carry
        row = pl.multiple_of(t * B, B)
        gates = gx_sc[pl.ds(row, B), :] + jnp.dot(
            h, w_hh, preferred_element_type=jnp.float32)           # (B, 4H)
        # (4) Two full-vreg EUP launches + one lane select instead of five
        #     quarter-vreg activations.
        sig = jax.nn.sigmoid(gates)
        th = jnp.tanh(gates)
        act = jnp.where(g_mask, th, sig)
        i_g = act[:, 0 * H:1 * H]
        f_g = act[:, 1 * H:2 * H]
        g_g = act[:, 2 * H:3 * H]
        o_g = act[:, 3 * H:4 * H]
        c_new = f_g * c + i_g * g_g
        h_new = o_g * jnp.tanh(c_new)
        return h_new, c_new

    h0 = jnp.zeros((B, H), jnp.float32)
    c0 = jnp.zeros((B, H), jnp.float32)
    h_last, _ = lax.fori_loop(0, S, step, (h0, c0), unroll=True)

    # (6) fc(lstm_out[:, -1, :]) with a lane-dense (padded) output store.
    out_ref[...] = (jnp.dot(h_last, wfc_ref[...],
                            preferred_element_type=jnp.float32)
                    + bfc_ref[...]).astype(out_ref.dtype)


def smiles_classifier_forward(tokens, params):
    """tokens: (B, S) int32 token ids. Returns (B, output_dim) float32."""
    fused = params["fused_embed_proj"]       # (V, 4H)
    w_hh_t = params["w_hh_t"]                # (H, 4H)
    w_fc_pad = params["w_fc_pad"]            # (H, O_pad)
    b_fc_pad = params["b_fc_pad"]            # (1, O_pad)
    O = params["output_dim"]

    B, S = tokens.shape
    V, G4 = fused.shape
    H = w_hh_t.shape[0]
    O_pad = w_fc_pad.shape[1]

    # Only the tiny int32 token matrix is reordered to time-major; all float
    # work happens inside the single pallas_call.
    # TODO(synk): the int32 transpose/reshape stays in XLA glue (negligible).
    tok_tm = tokens.T.reshape(S * B, 1)

    out_pad = pl.pallas_call(
        lstm_fc_kernel,
        out_shape=jax.ShapeDtypeStruct((B, O_pad), jnp.float32),
        grid_spec=pltpu.PrefetchScalarGridSpec(
            num_scalar_prefetch=0,
            grid=(1,),                                     # single invocation
            in_specs=[
                pl.BlockSpec((S * B, 1), lambda i: (0, 0)),     # tokens
                pl.BlockSpec((V, G4), lambda i: (0, 0)),        # fused table
                pl.BlockSpec((H, G4), lambda i: (0, 0)),        # W_hh^T
                pl.BlockSpec((H, O_pad), lambda i: (0, 0)),     # W_fc^T (pad)
                pl.BlockSpec((1, O_pad), lambda i: (0, 0)),     # b_fc (pad)
            ],
            out_specs=pl.BlockSpec((B, O_pad), lambda i: (0, 0)),
            scratch_shapes=[
                pltpu.VMEM((S * B, G4), jnp.float32),      # gates_x slab
            ],
        ),
        compiler_params=pltpu.CompilerParams(
            dimension_semantics=("arbitrary",),
        ),
    )(tok_tm, fused, w_hh_t, w_fc_pad, b_fc_pad)
    return out_pad[:, :O]


def init_params(key, vocab_size, embed_dim, hidden_dim, output_dim):
    ks = jax.random.split(key, 7)
    scale = 0.1
    emb = jax.random.normal(ks[0], (vocab_size, embed_dim), jnp.float32) * scale
    # PyTorch LSTM weights: weight_ih (4H, E), weight_hh (4H, H); store transposed.
    w_ih = jax.random.normal(ks[1], (4 * hidden_dim, embed_dim), jnp.float32) * scale
    w_hh = jax.random.normal(ks[2], (4 * hidden_dim, hidden_dim), jnp.float32) * scale
    b_ih = jax.random.normal(ks[3], (4 * hidden_dim,), jnp.float32) * scale
    b_hh = jax.random.normal(ks[4], (4 * hidden_dim,), jnp.float32) * scale
    w_fc = jax.random.normal(ks[5], (output_dim, hidden_dim), jnp.float32) * scale
    b_fc = jax.random.normal(ks[6], (output_dim,), jnp.float32) * scale

    w_ih_t = w_ih.T                           # (E, 4H)
    b_gates = (b_ih + b_hh)[None, :]          # (1, 4H)
    # (1) Fold embedding into the input projection (gather/matmul commute).
    fused = emb @ w_ih_t + b_gates            # (V, 4H)

    # (3) Precompute lane-padded FC weight/bias once.
    o_pad = -(-output_dim // LANE) * LANE
    w_fc_pad = jnp.zeros((hidden_dim, o_pad), jnp.float32).at[:, :output_dim].set(w_fc.T)
    b_fc_pad = jnp.zeros((1, o_pad), jnp.float32).at[:, :output_dim].set(b_fc[None, :])

    return {
        # kernel-side params
        "fused_embed_proj": fused,              # (V, 4H)
        "w_hh_t": w_hh.T,                       # (H, 4H)
        "w_fc_pad": w_fc_pad,                   # (H, O_pad)
        "b_fc_pad": b_fc_pad,                   # (1, O_pad)
        "output_dim": output_dim,
        # raw params (reference / faithfulness to the PyTorch module)
        "embedding": emb,
        "w_ih_t": w_ih_t,
        "b_gates": b_gates,
        "w_fc_t": w_fc.T,
        "b_fc": b_fc[None, :],
    }


def reference_forward(tokens, params):
    """Pure-JAX reference (same semantics as the PyTorch forward)."""
    emb = jnp.take(params["embedding"], tokens, axis=0)       # (B, S, E)
    B, S, E = emb.shape
    H = params["w_hh_t"].shape[0]
    h = jnp.zeros((B, H), jnp.float32)
    c = jnp.zeros((B, H), jnp.float32)
    for t in range(S):
        gates = emb[:, t, :] @ params["w_ih_t"] + h @ params["w_hh_t"] + params["b_gates"]
        i = jax.nn.sigmoid(gates[:, 0 * H:1 * H])
        f = jax.nn.sigmoid(gates[:, 1 * H:2 * H])
        g = jnp.tanh(gates[:, 2 * H:3 * H])
        o = jax.nn.sigmoid(gates[:, 3 * H:4 * H])
        c = f * c + i * g
        h = o * jnp.tanh(c)
    return h @ params["w_fc_t"] + params["b_fc"]


if __name__ == "__main__":
    vocab_size, embed_dim, hidden_dim, output_dim = 32, 32, 32, 4
    B, S = 8, 8

    key = jax.random.PRNGKey(0)
    kp, kt = jax.random.split(key)
    params = init_params(kp, vocab_size, embed_dim, hidden_dim, output_dim)
    tokens = jax.random.randint(kt, (B, S), 0, vocab_size, dtype=jnp.int32)

    out = smiles_classifier_forward(tokens, params)
    out = jax.block_until_ready(out)

    ref = reference_forward(tokens, params)
    assert out.shape == (B, output_dim)
    assert jnp.allclose(out, ref, atol=1e-4, rtol=1e-4), "mismatch vs reference"

    print("KERNEL_OK")
</pallas_src>

<mosaic_0001>
module attributes {stable_mosaic.version = 11 : i64} {
  func.func @lstm_fc_kernel(%arg0: i32, %arg1: memref<64x1xi32, #tpu.memory_space<vmem>>, %arg2: memref<32x128xf32, #tpu.memory_space<vmem>>, %arg3: memref<32x128xf32, #tpu.memory_space<vmem>>, %arg4: memref<32x128xf32, #tpu.memory_space<vmem>>, %arg5: memref<1x128xf32, #tpu.memory_space<vmem>>, %arg6: memref<8x128xf32, #tpu.memory_space<vmem>>, %arg7: memref<64x128xf32, #tpu.memory_space<vmem>>) attributes {dimension_semantics = [#tpu.dimension_semantics<arbitrary>], iteration_bounds = array<i64: 1>, scalar_prefetch = 0 : i64, scratch_operands = 1 : i64, tpu.core_type = #tpu.core_type<tc>, window_params = [{pipeline_mode = #tpu.pipeline_mode<synchronous>, transform_indices = @transform_0, window_bounds = array<i64: 64, 1>}, {pipeline_mode = #tpu.pipeline_mode<synchronous>, transform_indices = @transform_1, window_bounds = array<i64: 32, 128>}, {pipeline_mode = #tpu.pipeline_mode<synchronous>, transform_indices = @transform_2, window_bounds = array<i64: 32, 128>}, {pipeline_mode = #tpu.pipeline_mode<synchronous>, transform_indices = @transform_3, window_bounds = array<i64: 32, 128>}, {pipeline_mode = #tpu.pipeline_mode<synchronous>, transform_indices = @transform_4, window_bounds = array<i64: 1, 128>}, {pipeline_mode = #tpu.pipeline_mode<synchronous>, transform_indices = @transform_5, window_bounds = array<i64: 8, 128>}]} {
    %0 = tpu.iota {dimensions = array<i32: 1>} : vector<64x32xi32>
    %c0 = arith.constant 0 : index
    %c0_0 = arith.constant 0 : index
    %1 = vector.load %arg1[%c0, %c0_0] : memref<64x1xi32, #tpu.memory_space<vmem>>, vector<64x1xi32>
    %2 = vector.broadcast %1 : vector<64x1xi32> to vector<64x32xi32>
    %3 = arith.cmpi eq, %2, %0 : vector<64x32xi32>
    %4 = arith.extui %3 : vector<64x32xi1> to vector<64x32xi32>
    %5 = arith.sitofp %4 : vector<64x32xi32> to vector<64x32xf32>
    %c0_1 = arith.constant 0 : index
    %c0_2 = arith.constant 0 : index
    %6 = vector.load %arg2[%c0_1, %c0_2] : memref<32x128xf32, #tpu.memory_space<vmem>>, vector<32x128xf32>
    %cst = arith.constant dense<0.000000e+00> : vector<64x128xf32>
    %7 = tpu.matmul %5, %6, %cst {dimension_numbers = #tpu.dot_dimension_numbers<[1], [0], [0], [1], [0, 0, 1, 1], [], []>, precision = #tpu.contract_precision<fp32>} : vector<64x32xf32>, vector<32x128xf32>, vector<64x128xf32> -> vector<64x128xf32>
    %c0_3 = arith.constant 0 : index
    %c0_4 = arith.constant 0 : index
    %8 = vector.load %arg7[%c0_3, %c0_4] : memref<64x128xf32, #tpu.memory_space<vmem>>, vector<64x128xf32>
    tpu.vector_store %arg7[%c0_3, %c0_4], %7 {strides = array<i32>} : memref<64x128xf32, #tpu.memory_space<vmem>>, vector<64x128xf32>,
    %c0_5 = arith.constant 0 : index
    %c0_6 = arith.constant 0 : index
    %9 = vector.load %arg3[%c0_5, %c0_6] : memref<32x128xf32, #tpu.memory_space<vmem>>, vector<32x128xf32>
    %10 = tpu.iota {dimensions = array<i32: 1>} : vector<8x128xi32>
    %c64_i32 = arith.constant 64 : i32
    %11 = vector.broadcast %c64_i32 : i32 to vector<8x128xi32>
    %12 = arith.cmpi sge, %10, %11 : vector<8x128xi32>
    %c96_i32 = arith.constant 96 : i32
    %13 = vector.broadcast %c96_i32 : i32 to vector<8x128xi32>
    %14 = arith.cmpi slt, %10, %13 : vector<8x128xi32>
    %15 = arith.andi %12, %14 : vector<8x128xi1>
    %cst_7 = arith.constant 0.000000e+00 : f32
    %16 = vector.broadcast %cst_7 : f32 to vector<8x32xf32>
    %cst_8 = arith.constant 0.000000e+00 : f32
    %17 = vector.broadcast %cst_8 : f32 to vector<8x32xf32>
    %c0_i32 = arith.constant 0 : i32
    %c8_i32 = arith.constant 8 : i32
    %18 = arith.muli %c0_i32, %c8_i32 : i32
    %19 = tpu.assume_multiple %18, 8 : i32
    %20 = arith.index_cast %19 : i32 to index
    %c0_9 = arith.constant 0 : index
    %21 = vector.load %arg7[%20, %c0_9] : memref<64x128xf32, #tpu.memory_space<vmem>>, vector<8x128xf32>
    %cst_10 = arith.constant dense<0.000000e+00> : vector<8x128xf32>
    %22 = tpu.matmul %16, %9, %cst_10 {dimension_numbers = #tpu.dot_dimension_numbers<[1], [0], [0], [1], [0, 0, 1, 1], [], []>, precision = #tpu.contract_precision<fp32>} : vector<8x32xf32>, vector<32x128xf32>, vector<8x128xf32> -> vector<8x128xf32>
    %23 = arith.addf %21, %22 : vector<8x128xf32>
    %24 = arith.negf %23 : vector<8x128xf32>
    %25 = math.exp %24 : vector<8x128xf32>
    %cst_11 = arith.constant 1.000000e+00 : f32
    %26 = vector.broadcast %cst_11 : f32 to vector<8x128xf32>
    %27 = arith.addf %26, %25 : vector<8x128xf32>
    %28 = arith.divf %26, %27 : vector<8x128xf32>
    %29 = math.tanh %23 : vector<8x128xf32>
    %30 = arith.select %15, %29, %28 : vector<8x128xi1>, vector<8x128xf32>
    %31 = vector.extract_strided_slice %30 {offsets = [0, 0], sizes = [8, 32], strides = [1, 1]} : vector<8x128xf32> to vector<8x32xf32>
    %32 = vector.extract_strided_slice %30 {offsets = [0, 32], sizes = [8, 32], strides = [1, 1]} : vector<8x128xf32> to vector<8x32xf32>
    %33 = vector.extract_strided_slice %30 {offsets = [0, 64], sizes = [8, 32], strides = [1, 1]} : vector<8x128xf32> to vector<8x32xf32>
    %34 = vector.extract_strided_slice %30 {offsets = [0, 96], sizes = [8, 32], strides = [1, 1]} : vector<8x128xf32> to vector<8x32xf32>
    %35 = arith.mulf %32, %17 : vector<8x32xf32>
    %36 = arith.mulf %31, %33 : vector<8x32xf32>
    %37 = arith.addf %35, %36 : vector<8x32xf32>
    %38 = math.tanh %37 : vector<8x32xf32>
    %39 = arith.mulf %34, %38 : vector<8x32xf32>
    %c1_i32 = arith.constant 1 : i32
    %c8_i32_12 = arith.constant 8 : i32
    %40 = arith.muli %c1_i32, %c8_i32_12 : i32
    %41 = tpu.assume_multiple %40, 8 : i32
    %42 = arith.index_cast %41 : i32 to index
    %c0_13 = arith.constant 0 : index
    %43 = vector.load %arg7[%42, %c0_13] : memref<64x128xf32, #tpu.memory_space<vmem>>, vector<8x128xf32>
    %cst_14 = arith.constant dense<0.000000e+00> : vector<8x128xf32>
    %44 = tpu.matmul %39, %9, %cst_14 {dimension_numbers = #tpu.dot_dimension_numbers<[1], [0], [0], [1], [0, 0, 1, 1], [], []>, precision = #tpu.contract_precision<fp32>} : vector<8x32xf32>, vector<32x128xf32>, vector<8x128xf32> -> vector<8x128xf32>
    %45 = arith.addf %43, %44 : vector<8x128xf32>
    %46 = arith.negf %45 : vector<8x128xf32>
    %47 = math.exp %46 : vector<8x128xf32>
    %cst_15 = arith.constant 1.000000e+00 : f32
    %48 = vector.broadcast %cst_15 : f32 to vector<8x128xf32>
    %49 = arith.addf %48, %47 : vector<8x128xf32>
    %50 = arith.divf %48, %49 : vector<8x128xf32>
    %51 = math.tanh %45 : vector<8x128xf32>
    %52 = arith.select %15, %51, %50 : vector<8x128xi1>, vector<8x128xf32>
    %53 = vector.extract_strided_slice %52 {offsets = [0, 0], sizes = [8, 32], strides = [1, 1]} : vector<8x128xf32> to vector<8x32xf32>
    %54 = vector.extract_strided_slice %52 {offsets = [0, 32], sizes = [8, 32], strides = [1, 1]} : vector<8x128xf32> to vector<8x32xf32>
    %55 = vector.extract_strided_slice %52 {offsets = [0, 64], sizes = [8, 32], strides = [1, 1]} : vector<8x128xf32> to vector<8x32xf32>
    %56 = vector.extract_strided_slice %52 {offsets = [0, 96], sizes = [8, 32], strides = [1, 1]} : vector<8x128xf32> to vector<8x32xf32>
    %57 = arith.mulf %54, %37 : vector<8x32xf32>
    %58 = arith.mulf %53, %55 : vector<8x32xf32>
    %59 = arith.addf %57, %58 : vector<8x32xf32>
    %60 = math.tanh %59 : vector<8x32xf32>
    %61 = arith.mulf %56, %60 : vector<8x32xf32>
    %c2_i32 = arith.constant 2 : i32
    %c8_i32_16 = arith.constant 8 : i32
    %62 = arith.muli %c2_i32, %c8_i32_16 : i32
    %63 = tpu.assume_multiple %62, 8 : i32
    %64 = arith.index_cast %63 : i32 to index
    %c0_17 = arith.constant 0 : index
    %65 = vector.load %arg7[%64, %c0_17] : memref<64x128xf32, #tpu.memory_space<vmem>>, vector<8x128xf32>
    %cst_18 = arith.constant dense<0.000000e+00> : vector<8x128xf32>
    %66 = tpu.matmul %61, %9, %cst_18 {dimension_numbers = #tpu.dot_dimension_numbers<[1], [0], [0], [1], [0, 0, 1, 1], [], []>, precision = #tpu.contract_precision<fp32>} : vector<8x32xf32>, vector<32x128xf32>, vector<8x128xf32> -> vector<8x128xf32>
    %67 = arith.addf %65, %66 : vector<8x128xf32>
    %68 = arith.negf %67 : vector<8x128xf32>
    %69 = math.exp %68 : vector<8x128xf32>
    %cst_19 = arith.constant 1.000000e+00 : f32
    %70 = vector.broadcast %cst_19 : f32 to vector<8x128xf32>
    %71 = arith.addf %70, %69 : vector<8x128xf32>
    %72 = arith.divf %70, %71 : vector<8x128xf32>
    %73 = math.tanh %67 : vector<8x128xf32>
    %74 = arith.select %15, %73, %72 : vector<8x128xi1>, vector<8x128xf32>
    %75 = vector.extract_strided_slice %74 {offsets = [0, 0], sizes = [8, 32], strides = [1, 1]} : vector<8x128xf32> to vector<8x32xf32>
    %76 = vector.extract_strided_slice %74 {offsets = [0, 32], sizes = [8, 32], strides = [1, 1]} : vector<8x128xf32> to vector<8x32xf32>
    %77 = vector.extract_strided_slice %74 {offsets = [0, 64], sizes = [8, 32], strides = [1, 1]} : vector<8x128xf32> to vector<8x32xf32>
    %78 = vector.extract_strided_slice %74 {offsets = [0, 96], sizes = [8, 32], strides = [1, 1]} : vector<8x128xf32> to vector<8x32xf32>
    %79 = arith.mulf %76, %59 : vector<8x32xf32>
    %80 = arith.mulf %75, %77 : vector<8x32xf32>
    %81 = arith.addf %79, %80 : vector<8x32xf32>
    %82 = math.tanh %81 : vector<8x32xf32>
    %83 = arith.mulf %78, %82 : vector<8x32xf32>
    %c3_i32 = arith.constant 3 : i32
    %c8_i32_20 = arith.constant 8 : i32
    %84 = arith.muli %c3_i32, %c8_i32_20 : i32
    %85 = tpu.assume_multiple %84, 8 : i32
    %86 = arith.index_cast %85 : i32 to index
    %c0_21 = arith.constant 0 : index
    %87 = vector.load %arg7[%86, %c0_21] : memref<64x128xf32, #tpu.memory_space<vmem>>, vector<8x128xf32>
    %cst_22 = arith.constant dense<0.000000e+00> : vector<8x128xf32>
    %88 = tpu.matmul %83, %9, %cst_22 {dimension_numbers = #tpu.dot_dimension_numbers<[1], [0], [0], [1], [0, 0, 1, 1], [], []>, precision = #tpu.contract_precision<fp32>} : vector<8x32xf32>, vector<32x128xf32>, vector<8x128xf32> -> vector<8x128xf32>
    %89 = arith.addf %87, %88 : vector<8x128xf32>
    %90 = arith.negf %89 : vector<8x128xf32>
    %91 = math.exp %90 : vector<8x128xf32>
    %cst_23 = arith.constant 1.000000e+00 : f32
    %92 = vector.broadcast %cst_23 : f32 to vector<8x128xf32>
    %93 = arith.addf %92, %91 : vector<8x128xf32>
    %94 = arith.divf %92, %93 : vector<8x128xf32>
    %95 = math.tanh %89 : vector<8x128xf32>
    %96 = arith.select %15, %95, %94 : vector<8x128xi1>, vector<8x128xf32>
    %97 = vector.extract_strided_slice %96 {offsets = [0, 0], sizes = [8, 32], strides = [1, 1]} : vector<8x128xf32> to vector<8x32xf32>
    %98 = vector.extract_strided_slice %96 {offsets = [0, 32], sizes = [8, 32], strides = [1, 1]} : vector<8x128xf32> to vector<8x32xf32>
    %99 = vector.extract_strided_slice %96 {offsets = [0, 64], sizes = [8, 32], strides = [1, 1]} : vector<8x128xf32> to vector<8x32xf32>
    %100 = vector.extract_strided_slice %96 {offsets = [0, 96], sizes = [8, 32], strides = [1, 1]} : vector<8x128xf32> to vector<8x32xf32>
    %101 = arith.mulf %98, %81 : vector<8x32xf32>
    %102 = arith.mulf %97, %99 : vector<8x32xf32>
    %103 = arith.addf %101, %102 : vector<8x32xf32>
    %104 = math.tanh %103 : vector<8x32xf32>
    %105 = arith.mulf %100, %104 : vector<8x32xf32>
    %c4_i32 = arith.constant 4 : i32
    %c8_i32_24 = arith.constant 8 : i32
    %106 = arith.muli %c4_i32, %c8_i32_24 : i32
    %107 = tpu.assume_multiple %106, 8 : i32
    %108 = arith.index_cast %107 : i32 to index
    %c0_25 = arith.constant 0 : index
    %109 = vector.load %arg7[%108, %c0_25] : memref<64x128xf32, #tpu.memory_space<vmem>>, vector<8x128xf32>
    %cst_26 = arith.constant dense<0.000000e+00> : vector<8x128xf32>
    %110 = tpu.matmul %105, %9, %cst_26 {dimension_numbers = #tpu.dot_dimension_numbers<[1], [0], [0], [1], [0, 0, 1, 1], [], []>, precision = #tpu.contract_precision<fp32>} : vector<8x32xf32>, vector<32x128xf32>, vector<8x128xf32> -> vector<8x128xf32>
    %111 = arith.addf %109, %110 : vector<8x128xf32>
    %112 = arith.negf %111 : vector<8x128xf32>
    %113 = math.exp %112 : vector<8x128xf32>
    %cst_27 = arith.constant 1.000000e+00 : f32
    %114 = vector.broadcast %cst_27 : f32 to vector<8x128xf32>
    %115 = arith.addf %114, %113 : vector<8x128xf32>
    %116 = arith.divf %114, %115 : vector<8x128xf32>
    %117 = math.tanh %111 : vector<8x128xf32>
    %118 = arith.select %15, %117, %116 : vector<8x128xi1>, vector<8x128xf32>
    %119 = vector.extract_strided_slice %118 {offsets = [0, 0], sizes = [8, 32], strides = [1, 1]} : vector<8x128xf32> to vector<8x32xf32>
    %120 = vector.extract_strided_slice %118 {offsets = [0, 32], sizes = [8, 32], strides = [1, 1]} : vector<8x128xf32> to vector<8x32xf32>
    %121 = vector.extract_strided_slice %118 {offsets = [0, 64], sizes = [8, 32], strides = [1, 1]} : vector<8x128xf32> to vector<8x32xf32>
    %122 = vector.extract_strided_slice %118 {offsets = [0, 96], sizes = [8, 32], strides = [1, 1]} : vector<8x128xf32> to vector<8x32xf32>
    %123 = arith.mulf %120, %103 : vector<8x32xf32>
    %124 = arith.mulf %119, %121 : vector<8x32xf32>
    %125 = arith.addf %123, %124 : vector<8x32xf32>
    %126 = math.tanh %125 : vector<8x32xf32>
    %127 = arith.mulf %122, %126 : vector<8x32xf32>
    %c5_i32 = arith.constant 5 : i32
    %c8_i32_28 = arith.constant 8 : i32
    %128 = arith.muli %c5_i32, %c8_i32_28 : i32
    %129 = tpu.assume_multiple %128, 8 : i32
    %130 = arith.index_cast %129 : i32 to index
    %c0_29 = arith.constant 0 : index
    %131 = vector.load %arg7[%130, %c0_29] : memref<64x128xf32, #tpu.memory_space<vmem>>, vector<8x128xf32>
    %cst_30 = arith.constant dense<0.000000e+00> : vector<8x128xf32>
    %132 = tpu.matmul %127, %9, %cst_30 {dimension_numbers = #tpu.dot_dimension_numbers<[1], [0], [0], [1], [0, 0, 1, 1], [], []>, precision = #tpu.contract_precision<fp32>} : vector<8x32xf32>, vector<32x128xf32>, vector<8x128xf32> -> vector<8x128xf32>
    %133 = arith.addf %131, %132 : vector<8x128xf32>
    %134 = arith.negf %133 : vector<8x128xf32>
    %135 = math.exp %134 : vector<8x128xf32>
    %cst_31 = arith.constant 1.000000e+00 : f32
    %136 = vector.broadcast %cst_31 : f32 to vector<8x128xf32>
    %137 = arith.addf %136, %135 : vector<8x128xf32>
    %138 = arith.divf %136, %137 : vector<8x128xf32>
    %139 = math.tanh %133 : vector<8x128xf32>
    %140 = arith.select %15, %139, %138 : vector<8x128xi1>, vector<8x128xf32>
    %141 = vector.extract_strided_slice %140 {offsets = [0, 0], sizes = [8, 32], strides = [1, 1]} : vector<8x128xf32> to vector<8x32xf32>
    %142 = vector.extract_strided_slice %140 {offsets = [0, 32], sizes = [8, 32], strides = [1, 1]} : vector<8x128xf32> to vector<8x32xf32>
    %143 = vector.extract_strided_slice %140 {offsets = [0, 64], sizes = [8, 32], strides = [1, 1]} : vector<8x128xf32> to vector<8x32xf32>
    %144 = vector.extract_strided_slice %140 {offsets = [0, 96], sizes = [8, 32], strides = [1, 1]} : vector<8x128xf32> to vector<8x32xf32>
    %145 = arith.mulf %142, %125 : vector<8x32xf32>
    %146 = arith.mulf %141, %143 : vector<8x32xf32>
    %147 = arith.addf %145, %146 : vector<8x32xf32>
    %148 = math.tanh %147 : vector<8x32xf32>
    %149 = arith.mulf %144, %148 : vector<8x32xf32>
    %c6_i32 = arith.constant 6 : i32
    %c8_i32_32 = arith.constant 8 : i32
    %150 = arith.muli %c6_i32, %c8_i32_32 : i32
    %151 = tpu.assume_multiple %150, 8 : i32
    %152 = arith.index_cast %151 : i32 to index
    %c0_33 = arith.constant 0 : index
    %153 = vector.load %arg7[%152, %c0_33] : memref<64x128xf32, #tpu.memory_space<vmem>>, vector<8x128xf32>
    %cst_34 = arith.constant dense<0.000000e+00> : vector<8x128xf32>
    %154 = tpu.matmul %149, %9, %cst_34 {dimension_numbers = #tpu.dot_dimension_numbers<[1], [0], [0], [1], [0, 0, 1, 1], [], []>, precision = #tpu.contract_precision<fp32>} : vector<8x32xf32>, vector<32x128xf32>, vector<8x128xf32> -> vector<8x128xf32>
    %155 = arith.addf %153, %154 : vector<8x128xf32>
    %156 = arith.negf %155 : vector<8x128xf32>
    %157 = math.exp %156 : vector<8x128xf32>
    %cst_35 = arith.constant 1.000000e+00 : f32
    %158 = vector.broadcast %cst_35 : f32 to vector<8x128xf32>
    %159 = arith.addf %158, %157 : vector<8x128xf32>
    %160 = arith.divf %158, %159 : vector<8x128xf32>
    %161 = math.tanh %155 : vector<8x128xf32>
    %162 = arith.select %15, %161, %160 : vector<8x128xi1>, vector<8x128xf32>
    %163 = vector.extract_strided_slice %162 {offsets = [0, 0], sizes = [8, 32], strides = [1, 1]} : vector<8x128xf32> to vector<8x32xf32>
    %164 = vector.extract_strided_slice %162 {offsets = [0, 32], sizes = [8, 32], strides = [1, 1]} : vector<8x128xf32> to vector<8x32xf32>
    %165 = vector.extract_strided_slice %162 {offsets = [0, 64], sizes = [8, 32], strides = [1, 1]} : vector<8x128xf32> to vector<8x32xf32>
    %166 = vector.extract_strided_slice %162 {offsets = [0, 96], sizes = [8, 32], strides = [1, 1]} : vector<8x128xf32> to vector<8x32xf32>
    %167 = arith.mulf %164, %147 : vector<8x32xf32>
    %168 = arith.mulf %163, %165 : vector<8x32xf32>
    %169 = arith.addf %167, %168 : vector<8x32xf32>
    %170 = math.tanh %169 : vector<8x32xf32>
    %171 = arith.mulf %166, %170 : vector<8x32xf32>
    %c7_i32 = arith.constant 7 : i32
    %c8_i32_36 = arith.constant 8 : i32
    %172 = arith.muli %c7_i32, %c8_i32_36 : i32
    %173 = tpu.assume_multiple %172, 8 : i32
    %174 = arith.index_cast %173 : i32 to index
    %c0_37 = arith.constant 0 : index
    %175 = vector.load %arg7[%174, %c0_37] : memref<64x128xf32, #tpu.memory_space<vmem>>, vector<8x128xf32>
    %cst_38 = arith.constant dense<0.000000e+00> : vector<8x128xf32>
    %176 = tpu.matmul %171, %9, %cst_38 {dimension_numbers = #tpu.dot_dimension_numbers<[1], [0], [0], [1], [0, 0, 1, 1], [], []>, precision = #tpu.contract_precision<fp32>} : vector<8x32xf32>, vector<32x128xf32>, vector<8x128xf32> -> vector<8x128xf32>
    %177 = arith.addf %175, %176 : vector<8x128xf32>
    %178 = arith.negf %177 : vector<8x128xf32>
    %179 = math.exp %178 : vector<8x128xf32>
    %cst_39 = arith.constant 1.000000e+00 : f32
    %180 = vector.broadcast %cst_39 : f32 to vector<8x128xf32>
    %181 = arith.addf %180, %179 : vector<8x128xf32>
    %182 = arith.divf %180, %181 : vector<8x128xf32>
    %183 = math.tanh %177 : vector<8x128xf32>
    %184 = arith.select %15, %183, %182 : vector<8x128xi1>, vector<8x128xf32>
    %185 = vector.extract_strided_slice %184 {offsets = [0, 0], sizes = [8, 32], strides = [1, 1]} : vector<8x128xf32> to vector<8x32xf32>
    %186 = vector.extract_strided_slice %184 {offsets = [0, 32], sizes = [8, 32], strides = [1, 1]} : vector<8x128xf32> to vector<8x32xf32>
    %187 = vector.extract_strided_slice %184 {offsets = [0, 64], sizes = [8, 32], strides = [1, 1]} : vector<8x128xf32> to vector<8x32xf32>
    %188 = vector.extract_strided_slice %184 {offsets = [0, 96], sizes = [8, 32], strides = [1, 1]} : vector<8x128xf32> to vector<8x32xf32>
    %189 = arith.mulf %186, %169 : vector<8x32xf32>
    %190 = arith.mulf %185, %187 : vector<8x32xf32>
    %191 = arith.addf %189, %190 : vector<8x32xf32>
    %192 = math.tanh %191 : vector<8x32xf32>
    %193 = arith.mulf %188, %192 : vector<8x32xf32>
    %c8_i32_40 = arith.constant 8 : i32
    %c0_41 = arith.constant 0 : index
    %c0_42 = arith.constant 0 : index
    %194 = vector.load %arg4[%c0_41, %c0_42] : memref<32x128xf32, #tpu.memory_space<vmem>>, vector<32x128xf32>
    %cst_43 = arith.constant dense<0.000000e+00> : vector<8x128xf32>
    %195 = tpu.matmul %193, %194, %cst_43 {dimension_numbers = #tpu.dot_dimension_numbers<[1], [0], [0], [1], [0, 0, 1, 1], [], []>, precision = #tpu.contract_precision<fp32>} : vector<8x32xf32>, vector<32x128xf32>, vector<8x128xf32> -> vector<8x128xf32>
    %c0_44 = arith.constant 0 : index
    %c0_45 = arith.constant 0 : index
    %196 = vector.load %arg5[%c0_44, %c0_45] : memref<1x128xf32, #tpu.memory_space<vmem>>, vector<1x128xf32>
    %197 = vector.broadcast %196 : vector<1x128xf32> to vector<8x128xf32>
    %198 = arith.addf %195, %197 : vector<8x128xf32>
    %c0_46 = arith.constant 0 : index
    %c0_47 = arith.constant 0 : index
    %199 = vector.load %arg6[%c0_46, %c0_47] : memref<8x128xf32, #tpu.memory_space<vmem>>, vector<8x128xf32>
    tpu.vector_store %arg6[%c0_46, %c0_47], %198 {strides = array<i32>} : memref<8x128xf32, #tpu.memory_space<vmem>>, vector<8x128xf32>,
    return
  }
  func.func @transform_0(%arg0: i32) -> (i32, i32) {
    %c0_i32 = arith.constant 0 : i32
    %c0_i32_0 = arith.constant 0 : i32
    %c0_i32_1 = arith.constant 0 : i32
    return %c0_i32, %c0_i32_0 : i32, i32
  }
  func.func @transform_1(%arg0: i32) -> (i32, i32) {
    %c0_i32 = arith.constant 0 : i32
    %c0_i32_0 = arith.constant 0 : i32
    %c0_i32_1 = arith.constant 0 : i32
    return %c0_i32, %c0_i32_0 : i32, i32
  }
  func.func @transform_2(%arg0: i32) -> (i32, i32) {
    %c0_i32 = arith.constant 0 : i32
    %c0_i32_0 = arith.constant 0 : i32
    %c0_i32_1 = arith.constant 0 : i32
    return %c0_i32, %c0_i32_0 : i32, i32
  }
  func.func @transform_3(%arg0: i32) -> (i32, i32) {
    %c0_i32 = arith.constant 0 : i32
    %c0_i32_0 = arith.constant 0 : i32
    %c0_i32_1 = arith.constant 0 : i32
    return %c0_i32, %c0_i32_0 : i32, i32
  }
  func.func @transform_4(%arg0: i32) -> (i32, i32) {
    %c0_i32 = arith.constant 0 : i32
    %c0_i32_0 = arith.constant 0 : i32
    %c0_i32_1 = arith.constant 0 : i32
    return %c0_i32, %c0_i32_0 : i32, i32
  }
  func.func @transform_5(%arg0: i32) -> (i32, i32) {
    %c0_i32 = arith.constant 0 : i32
    %c0_i32_0 = arith.constant 0 : i32
    %c0_i32_1 = arith.constant 0 : i32
    return %c0_i32, %c0_i32_0 : i32, i32
  }
}

</mosaic_0001>

<bundles_post_ra>
// kernel: tpu_custom_call.1
= control target key start
LH: loop header
LB: loop body
LE: loop exit
PB: predicated region body
PF: predicated region fallthrough
CT: control target
= control target key end

     0   :  { %10 = vsyncpa [#allocation4], 0  ;;  %s3337_s0 = inlined_call_operand.vmem [shape: s32[64,1], index: 0, kind: input, shape index: {}]   ;;  %s3338_s1 = inlined_call_operand.vmem [shape: f32[32,128], index: 1, kind: input, shape index: {}]   ;;  %s3339_s2 = inlined_call_operand.vmem [shape: f32[32,128], index: 2, kind: input, shape index: {}]   ;;  %s3340_s3 = inlined_call_operand.hbm [shape: f32[32,128], index: 3, kind: input, shape index: {}]   ;;  %s3341_s4 = inlined_call_operand.vmem [shape: f32[1,128], index: 4, kind: input, shape index: {}]   ;;  %s3342_s5 = inlined_call_operand.hbm [shape: f32[8,128], index: 5, kind: output, shape index: {}]  }
   0x1   :  { %11 = vsyncpa [#allocation5], 0  ;;  %s22_s20 = sshll.u32 %s3340_s3, 4  ;;  %s2770_s21 = smov [#allocation3]   ;;  %s23_s20 = int_to_ptr.hbm [resolvable:$true] %s22_s20 }
   0x2   :  { %s24_s22 = sshll.u32 %s2770_s21, 4  ;;  %s2771_s23 = smov 128   ;;  %s25_s22 = int_to_ptr.vmem [resolvable:$true] %s24_s22 }
   0x3   :  { %s2772_s24 = smov 8  }
   0x4   :  { %30 = dma.hbm_to_vmem [thread:$0]  %s23_s20, 512, %s25_s22, [#allocation4], %s2771_s23, %s2771_s23, %s2772_s24  }
   0x5   :  { %2766 = dma.done.wait [#allocation4], 512  }
   0x6   :  { %2767 = vsyncadd [#allocation4], 4294966784  ;;  %v2773_v0 = vmov 0   ;;  %v41_v1 = vld [vmem:[%s3337_s0 + $0x10] sm:$0xff]  ;;  %v39_v2 = vld [vmem:[%s3337_s0] sm:$0xff]  ;;  %v37_v42 = vlaneseq  ;;  %vm99_vm0 = vcmask 261120  }
   0x7   :  { %2651 = vset.pattern.permute.xlu1 %v2773_v0  ;;  %2650 = vset.pattern.permute.xlu0 %v2773_v0  ;;  %v43_v3 = vld [vmem:[%s3337_s0 + $0x20] sm:$0xff]  ;;  %v98_v4 = vld [vmem:[%s3338_s1 + $0x18] sm:$0xff]  ;;  %v97_v6 = vld [vmem:[%s3338_s1 + $0x10] sm:$0xff]  ;;  %v2774_v49 = vmov 0.0   ;;  %s2776_s3 = smov 32   ;;  %s2777_s6 = smov [#allocation6]  }
   0x8   :  { %2652 = vset.pattern.permute.xlu2 %v2773_v0  ;;  %54 = vperm.xlu1 %2651, %v41_v1   ;;  %v136_v5 = vand.u32 4294901760, %v98_v4  ;;  %v96_v7 = vld [vmem:[%s3338_s1 + $0x8] sm:$0xff]  ;;  %v138_v8 = vand.u32 4294901760, %v97_v6  ;;  %v42_v11 = vld [vmem:[%s3337_s0 + $0x18] sm:$0xff]  ;;  %v45_v25 = vld [vmem:[%s3337_s0 + $0x30] sm:$0xff]  ;;  %v2878_v45 = vand.u32 127, %v37_v42 }
   0x9   :  { %48 = vperm.xlu0 %2650, %v39_v2   ;;  %60 = vperm.xlu2 %2652, %v43_v3   ;;  %v140_v9 = vand.u32 4294901760, %v96_v7  ;;  %v40_v12 = vld [vmem:[%s3337_s0 + $0x8] sm:$0xff]  ;;  %v46_v24 = vld [vmem:[%s3337_s0 + $0x38] sm:$0xff]  ;;  %v95_v27 = vld [vmem:[%s3338_s1] sm:$0xff]  ;;  %s2590_s7 = sshll.u32 %s2777_s6, 4  ;;  %s2592_s10 = sshll.u32 %s3342_s5, 4  ;;  %s2591_s7 = int_to_ptr.vmem [resolvable:$true] %s2590_s7  ;;  %s2593_s10 = int_to_ptr.hbm [resolvable:$true] %s2592_s10 }
   0xa   :  { %v222_v10 = vsub.f32 %v98_v4, %v136_v5  ;;  %356 = vmatpush.msra.mxu3 %v136_v5  ;;  %137 = vmatpush.msra.mxu0 %v136_v5  ;;  %v228_v13 = vsub.f32 %v97_v6, %v138_v8  ;;  %v44_v16 = vld [vmem:[%s3337_s0 + $0x28] sm:$0xff]  ;;  %v142_v28 = vand.u32 4294901760, %v95_v27  ;;  %v537_v33 = vld [vmem:[%s3339_s2 + $0x18] sm:$0xff]  ;;  %v536_v39 = vld [vmem:[%s3339_s2 + $0x10] sm:$0xff]  ;;  %vm538_vm9 = vcmp.ge.s32.totalorder %v2878_v45, 64 }
   0xb   :  { %v234_v14 = vsub.f32 %v96_v7, %v140_v9  ;;  %v2850_v34 = vand.u32 4294901760, %v537_v33  ;;  %v2867_v40 = vand.u32 4294901760, %v536_v39  ;;  %v535_v54 = vld [vmem:[%s3339_s2 + $0x8] sm:$0xff]  ;;  %vm539_vm10 = vcmp.lt.s32.totalorder %v2878_v45, 96 }
   0xc   :  { %v223_v15 = vand.u32 4294901760, %v222_v10  ;;  %292 = vmatpush.msra.mxu2 %v222_v10  ;;  %358 = vmatpush.msra.mxu3 %v138_v8  ;;  %v229_v17 = vand.u32 4294901760, %v228_v13  ;;  %v240_v29 = vsub.f32 %v95_v27, %v142_v28  ;;  %v2897_v55 = vand.u32 4294901760, %v535_v54  ;;  %vm3091_vm12 = vmand %vm538_vm9, %vm539_vm10 }
   0xd   :  { %v235_v18 = vand.u32 4294901760, %v234_v14  ;;  %139 = vmatpush.msra.mxu0 %v138_v8  ;;  %v2854_v35 = vsub.f32 %v537_v33, %v2850_v34  ;;  %v2871_v41 = vsub.f32 %v536_v39, %v2867_v40 }
   0xe   :  { %v224_v19 = vsub.f32 %v222_v10, %v223_v15  ;;  %v230_v20 = vsub.f32 %v228_v13, %v229_v17  ;;  %295 = vmatpush.msra.mxu2 %v228_v13  ;;  %360 = vmatpush.msra.mxu3 %v140_v9  ;;  %v241_v30 = vand.u32 4294901760, %v240_v29  ;;  %v2905_v59 = vsub.f32 %v535_v54, %v2897_v55 }
   0xf   :  { %v236_v21 = vsub.f32 %v234_v14, %v235_v18  ;;  %141 = vmatpush.msra.mxu0 %v140_v9  ;;  %v2857_v36 = vand.u32 4294901760, %v2854_v35  ;;  %v2874_v43 = vand.u32 4294901760, %v2871_v41 }
  0x10   :  { %57 = vperm.xlu1 %2651, %v42_v11   ;;  %v225_v22 = vand.u32 4294901760, %v224_v19  ;;  %v231_v23 = vand.u32 4294901760, %v230_v20  ;;  %298 = vmatpush.msra.mxu2 %v234_v14  ;;  %v242_v31 = vsub.f32 %v240_v29, %v241_v30  ;;  %v2918_v0 = vand.u32 4294901760, %v2905_v59 }
  0x11   :  { %51 = vperm.xlu0 %2650, %v40_v12   ;;  %63 = vperm.xlu2 %2652, %v44_v16   ;;  %v237_v26 = vand.u32 4294901760, %v236_v21  ;;  %v589_v37 = vsub.f32 %v2854_v35, %v2857_v36  ;;  %v595_v44 = vsub.f32 %v2871_v41, %v2874_v43 }
  0x12   :  { %226 = vmatpush.msra.mxu1 %v225_v22  ;;  %362 = vmatpush.msra.mxu3 %v142_v28  ;;  %v243_v32 = vand.u32 4294901760, %v242_v31  ;;  %v601_v3 = vsub.f32 %v2905_v59, %v2918_v0 }
  0x13   :  { %143 = vmatpush.msra.mxu0 %v142_v28  ;;  %301 = vmatpush.msra.mxu2 %v240_v29  ;;  %v2861_v38 = vand.u32 4294901760, %v589_v37  ;;  %v2880_v46 = vand.u32 4294901760, %v595_v44 }
  0x14   :  { %232 = vmatpush.msra.mxu1 %v231_v23  ;;  %v2924_v6 = vand.u32 4294901760, %v601_v3 }
  0x15   :  { %427 = vmatpush.msrb.mxu0 %v223_v15  ;;  %558 = vmatpush.msrb.mxu2 %v2850_v34  ;;  %v534_v15 = vld [vmem:[%s3339_s2] sm:$0xff]  ;;  %s2775_s2 = smov 64  }
  0x16   :  { %238 = vmatpush.msra.mxu1 %v237_v26  ;;  %591 = vmatpush.msrb.mxu3 %v2861_v38  ;;  %v2940_v16 = vand.u32 4294901760, %v534_v15 }
  0x17   :  { %431 = vmatpush.msrb.mxu0 %v229_v17  ;;  %560 = vmatpush.msrb.mxu2 %v2867_v40 }
  0x18   :  { %69 = vperm.xlu1 %2651, %v46_v24   ;;  %244 = vmatpush.msra.mxu1 %v243_v32 }
  0x19   :  { %66 = vperm.xlu0 %2650, %v45_v25   ;;  %435 = vmatpush.msrb.mxu0 %v235_v18  ;;  %v2947_v18 = vsub.f32 %v534_v15, %v2940_v16 }
  0x1a   :  { %486 = vmatpush.msrb.mxu1 %v136_v5  ;;  %597 = vmatpush.msrb.mxu3 %v2880_v46 }
  0x1b   :  { %439 = vmatpush.msrb.mxu0 %v241_v30  ;;  %562 = vmatpush.msrb.mxu2 %v2897_v55  ;;  %v2956_v23 = vand.u32 4294901760, %v2947_v18 }
  0x1c   :  { %488 = vmatpush.msrb.mxu1 %v138_v8  ;;  %603 = vmatpush.msrb.mxu3 %v2924_v6 }
  0x1d   :  { %564 = vmatpush.msrb.mxu2 %v2940_v16  ;;  %v607_v24 = vsub.f32 %v2947_v18, %v2956_v23 }
  0x1e   :  { %490 = vmatpush.msrb.mxu1 %v140_v9 }
  0x1f   :  { %v2963_v27 = vand.u32 4294901760, %v607_v24 }
  0x20   :  { %492 = vmatpush.msrb.mxu1 %v142_v28 }
  0x21   :  { %609 = vmatpush.msrb.mxu3 %v2963_v27 }
  0x63   :  { %v61_v9 = vpop.permute.xlu2 %60 }
  0x64   :  { %vm75_vm5 = vcmp.eq.s32.totalorder %v61_v9, %v2878_v45 }
  0x65   :  { %v2943_v17 = vsel %vm75_vm5, 1.0, %v2774_v49 }
  0x66   :  { %v113_v22 = vsel %vm99_vm0, %v2943_v17, 0 }
  0x67   :  { %v177_v26 = vsub.f32 %v113_v22, %v113_v22 }
  0x69   :  { %v178_v31 = vand.u32 4294901760, %v177_v26 }
  0x6b   :  { %v64_v20 = vpop.permute.xlu2 %63  ;;  %v179_v33 = vsub.f32 %v177_v26, %v178_v31 }
  0x6c   :  { %vm76_vm6 = vcmp.eq.s32.totalorder %v64_v20, %v2878_v45 }
  0x6d   :  { %v2967_v28 = vsel %vm76_vm6, 1.0, %v2774_v49  ;;  %v180_v44 = vand.u32 4294901760, %v179_v33 }
  0x6e   :  { %v116_v32 = vsel %vm99_vm0, %v2967_v28, 0 }
  0x6f   :  { %v185_v37 = vsub.f32 %v116_v32, %v116_v32 }
  0x7a   :  { %v55_v48 = vpop.permute.xlu1 %54 }
  0x7b   :  { %v49_v47 = vpop.permute.xlu0 %48  ;;  %vm73_vm2 = vcmp.eq.s32.totalorder %v55_v48, %v2878_v45 }
  0x7c   :  { %vm71_vm1 = vcmp.eq.s32.totalorder %v49_v47, %v2878_v45  ;;  %v2900_v56 = vsel %vm73_vm2, 1.0, %v2774_v49  ;;  %v186_v47 = vand.u32 4294901760, %v185_v37 }
  0x7d   :  { %v2885_v50 = vsel %vm71_vm1, 1.0, %v2774_v49  ;;  %v107_v63 = vsel %vm99_vm0, %v2900_v56, 0 }
  0x7e   :  { %2610 = vmatmul.msk.f32.vlgmr.msra.gmra.mxu1 %vm99_vm0, %v2885_v50  ;;  %v101_v51 = vsel %vm99_vm0, %v2885_v50, 0  ;;  %v161_v5 = vsub.f32 %v107_v63, %v107_v63 }
  0x7f   :  { %v145_v52 = vsub.f32 %v101_v51, %v101_v51  ;;  %1180 = vmatpush.msra.mxu1 %v2850_v34  ;;  %v187_v51 = vsub.f32 %v185_v37, %v186_v47 }
  0x80   :  { %v162_v11 = vand.u32 4294901760, %v161_v5 }
  0x81   :  { %304 = vmatmul.f32.vlgmr.msra.gmra.mxu2 %v145_v52  ;;  %v146_v53 = vand.u32 4294901760, %v145_v52  ;;  %1182 = vmatpush.msra.mxu1 %v2867_v40  ;;  %v188_v54 = vand.u32 4294901760, %v187_v51 }
  0x82   :  { %v58_v1 = vpop.permute.xlu1 %57  ;;  %v163_v13 = vsub.f32 %v161_v5, %v162_v11  ;;  %629 = vmatpush.msra.mxu2 %v2854_v35 }
  0x83   :  { %366 = vmatmul.f32.vlgmr.msra.gmra.mxu3 %v146_v53  ;;  %v52_v57 = vpop.permute.xlu0 %51  ;;  %v147_v58 = vsub.f32 %v145_v52, %v146_v53  ;;  %1184 = vmatpush.msra.mxu1 %v2897_v55  ;;  %vm74_vm4 = vcmp.eq.s32.totalorder %v58_v1, %v2878_v45 }
  0x84   :  { %vm72_vm3 = vcmp.eq.s32.totalorder %v52_v57, %v2878_v45  ;;  %v2928_v7 = vsel %vm74_vm4, 1.0, %v2774_v49  ;;  %v164_v19 = vand.u32 4294901760, %v163_v13  ;;  %632 = vmatpush.msra.mxu2 %v2871_v41  ;;  %658 = vmatpush.msra.mxu3 %v2850_v34 }
  0x85   :  { %v2909_v60 = vsel %vm72_vm3, 1.0, %v2774_v49  ;;  %v148_v61 = vand.u32 4294901760, %v147_v58  ;;  %v110_v12 = vsel %vm99_vm0, %v2928_v7, 0  ;;  %1186 = vmatpush.msra.mxu1 %v2940_v16 }
  0x86   :  { %2611 = vmatmul.msk.f32.gmra.mxu1 %vm99_vm0, %v2909_v60  ;;  %v104_v62 = vsel %vm99_vm0, %v2909_v60, 0  ;;  %v169_v14 = vsub.f32 %v110_v12, %v110_v12  ;;  %635 = vmatpush.msra.mxu2 %v2905_v59 }
  0x87   :  { %149 = vmatmul.f32.vlgmr.msra.gmra.mxu0 %v148_v61  ;;  %v153_v2 = vsub.f32 %v104_v62, %v104_v62  ;;  %660 = vmatpush.msra.mxu3 %v2867_v40 }
  0x88   :  { %1149 = vmatpush.msra.mxu0 %v2857_v36  ;;  %v170_v21 = vand.u32 4294901760, %v169_v14  ;;  %638 = vmatpush.msra.mxu2 %v2947_v18 }
  0x89   :  { %309 = vmatmul.f32.gmra.mxu2 %v153_v2  ;;  %v154_v4 = vand.u32 4294901760, %v153_v2  ;;  %662 = vmatpush.msra.mxu3 %v2897_v55 }
  0x8a   :  { %1153 = vmatpush.msra.mxu0 %v2874_v43  ;;  %v171_v25 = vsub.f32 %v169_v14, %v170_v21  ;;  %v70_v42 = vpop.permute.xlu1 %69 }
  0x8b   :  { %372 = vmatmul.f32.gmra.mxu3 %v154_v4  ;;  %v155_v8 = vsub.f32 %v153_v2, %v154_v4  ;;  %v67_v29 = vpop.permute.xlu0 %66  ;;  %vm78_vm8 = vcmp.eq.s32.totalorder %v70_v42, %v2878_v45 }
  0x8c   :  { %1157 = vmatpush.msra.mxu0 %v2918_v0  ;;  %v172_v30 = vand.u32 4294901760, %v171_v25  ;;  %vm77_vm7 = vcmp.eq.s32.totalorder %v67_v29, %v2878_v45  ;;  %664 = vmatpush.msra.mxu3 %v2940_v16  ;;  %v2989_v53 = vsel %vm78_vm8, 1.0, %v2774_v49 }
  0x8d   :  { %v156_v10 = vand.u32 4294901760, %v155_v8  ;;  %v2980_v39 = vsel %vm77_vm7, 1.0, %v2774_v49  ;;  %v122_v58 = vsel %vm99_vm0, %v2989_v53, 0 }
  0x8e   :  { %2612 = vmatmul.msk.f32.gmra.mxu1 %vm99_vm0, %v2900_v56  ;;  %1161 = vmatpush.msra.mxu0 %v2956_v23  ;;  %v119_v48 = vsel %vm99_vm0, %v2980_v39, 0  ;;  %v201_v62 = vsub.f32 %v122_v58, %v122_v58 }
  0x8f   :  { %157 = vmatmul.f32.gmra.mxu0 %v156_v10  ;;  %v193_v52 = vsub.f32 %v119_v48, %v119_v48 }
  0x90   :  { %v202_v1 = vand.u32 4294901760, %v201_v62 }
  0x91   :  { %314 = vmatmul.f32.gmra.mxu2 %v161_v5  ;;  %v194_v57 = vand.u32 4294901760, %v193_v52 }
  0x92   :  { %v203_v2 = vsub.f32 %v201_v62, %v202_v1 }
  0x93   :  { %378 = vmatmul.f32.gmra.mxu3 %v162_v11  ;;  %v195_v61 = vsub.f32 %v193_v52, %v194_v57 }
  0x94   :  { %v204_v3 = vand.u32 4294901760, %v203_v2 }
  0x95   :  { %v196_v63 = vand.u32 4294901760, %v195_v61 }
  0x96   :  { %2613 = vmatmul.msk.f32.gmra.mxu1 %vm99_vm0, %v2928_v7 }
  0x97   :  { %165 = vmatmul.f32.gmra.mxu0 %v164_v19 }
  0x99   :  { %319 = vmatmul.f32.gmra.mxu2 %v169_v14 }
  0x9b   :  { %384 = vmatmul.f32.gmra.mxu3 %v170_v21 }
  0x9e   :  { %2614 = vmatmul.msk.f32.gmra.mxu1 %vm99_vm0, %v2943_v17 }
  0x9f   :  { %173 = vmatmul.f32.gmra.mxu0 %v172_v30 }
  0xa1   :  { %324 = vmatmul.f32.gmra.mxu2 %v177_v26 }
  0xa3   :  { %390 = vmatmul.f32.gmra.mxu3 %v178_v31 }
  0xa6   :  { %2615 = vmatmul.msk.f32.gmra.mxu1 %vm99_vm0, %v2967_v28 }
  0xa7   :  { %181 = vmatmul.f32.gmra.mxu0 %v180_v44 }
  0xa9   :  { %329 = vmatmul.f32.gmra.mxu2 %v185_v37 }
  0xab   :  { %396 = vmatmul.f32.gmra.mxu3 %v186_v47 }
  0xae   :  { %2616 = vmatmul.msk.f32.gmra.mxu1 %vm99_vm0, %v2980_v39 }
  0xaf   :  { %189 = vmatmul.f32.gmra.mxu0 %v188_v54 }
  0xb1   :  { %334 = vmatmul.f32.gmra.mxu2 %v193_v52 }
  0xb3   :  { %402 = vmatmul.f32.gmra.mxu3 %v194_v57 }
  0xb6   :  { %2617 = vmatmul.msk.f32.gmra.mxu1 %vm99_vm0, %v2989_v53 }
  0xb7   :  { %197 = vmatmul.f32.gmra.mxu0 %v196_v63 }
  0xb9   :  { %339 = vmatmul.f32.gmra.mxu2 %v201_v62 }
  0xbb   :  { %408 = vmatmul.f32.gmra.mxu3 %v202_v1 }
  0xbe   :  { %2626 = vmatmul.msk.f32.vlgmr.msrb.gmra.mxu1 %vm99_vm0, %v2885_v50 }
  0xbf   :  { %205 = vmatmul.f32.gmra.mxu0 %v204_v3  ;;  %1351 = vmatpush.msrb.mxu1 %v2850_v34 }
  0xc1   :  { %570 = vmatmul.f32.vlgmr.msrb.gmra.mxu2 %v2774_v49  ;;  %1353 = vmatpush.msrb.mxu1 %v2867_v40 }
  0xc2   :  { %687 = vmatpush.msrb.mxu2 %v2857_v36 }
  0xc3   :  { %611 = vmatmul.f32.vlgmr.msrb.gmra.mxu3 %v2774_v49  ;;  %1355 = vmatpush.msrb.mxu1 %v2897_v55 }
  0xc4   :  { %691 = vmatpush.msrb.mxu2 %v2874_v43  ;;  %718 = vmatpush.msrb.mxu3 %v2850_v34 }
  0xc5   :  { %1357 = vmatpush.msrb.mxu1 %v2940_v16 }
  0xc6   :  { %2627 = vmatmul.msk.f32.gmra.mxu1 %vm99_vm0, %v2909_v60  ;;  %695 = vmatpush.msrb.mxu2 %v2918_v0 }
  0xc7   :  { %2618 = vmatmul.msk.f32.vlgmr.msrb.gmra.mxu0 %vm99_vm0, %v2885_v50  ;;  %720 = vmatpush.msrb.mxu3 %v2867_v40 }
  0xc8   :  { %699 = vmatpush.msrb.mxu2 %v2956_v23  ;;  %1322 = vmatpush.msrb.mxu0 %v2854_v35 }
  0xc9   :  { %641 = vmatmul.f32.vlgmr.msra.gmra.mxu2 %v2774_v49  ;;  %722 = vmatpush.msrb.mxu3 %v2897_v55 }
  0xca   :  { %789 = vmatpush.msra.mxu2 %v2850_v34  ;;  %1325 = vmatpush.msrb.mxu0 %v2871_v41 }
  0xcb   :  { %668 = vmatmul.f32.vlgmr.msra.gmra.mxu3 %v2774_v49 }
  0xcc   :  { %724 = vmatpush.msrb.mxu3 %v2940_v16  ;;  %791 = vmatpush.msra.mxu2 %v2867_v40 }
  0xcd   :  { %1328 = vmatpush.msrb.mxu0 %v2905_v59 }
  0xce   :  { %822 = vmatpush.msra.mxu3 %v2861_v38  ;;  %2628 = vmatmul.msk.f32.gmra.mxu1 %vm99_vm0, %v2900_v56 }
  0xcf   :  { %793 = vmatpush.msra.mxu2 %v2897_v55  ;;  %2619 = vmatmul.msk.f32.gmra.mxu0 %vm99_vm0, %v2909_v60 }
  0xd0   :  { %828 = vmatpush.msra.mxu3 %v2880_v46  ;;  %1331 = vmatpush.msrb.mxu0 %v2947_v18 }
  0xd1   :  { %795 = vmatpush.msra.mxu2 %v2940_v16 }
  0xd2   :  { %701 = vmatmul.f32.vlgmr.msrb.gmra.mxu2 %v2774_v49  ;;  %834 = vmatpush.msra.mxu3 %v2924_v6 }
  0xd3   :  { %860 = vmatpush.msrb.mxu2 %v2854_v35  ;;  %726 = vmatmul.f32.vlgmr.msrb.gmra.mxu3 %v2774_v49 }
  0xd4   :  { %840 = vmatpush.msra.mxu3 %v2963_v27 }
  0xd5   :  { %863 = vmatpush.msrb.mxu2 %v2871_v41 }
  0xd6   :  { %889 = vmatpush.msrb.mxu3 %v2850_v34  ;;  %2629 = vmatmul.msk.f32.gmra.mxu1 %vm99_vm0, %v2928_v7 }
  0xd7   :  { %866 = vmatpush.msrb.mxu2 %v2905_v59  ;;  %2620 = vmatmul.msk.f32.gmra.mxu0 %vm99_vm0, %v2900_v56 }
  0xd8   :  { %891 = vmatpush.msrb.mxu3 %v2867_v40 }
  0xd9   :  { %869 = vmatpush.msrb.mxu2 %v2947_v18 }
  0xda   :  { %893 = vmatpush.msrb.mxu3 %v2897_v55 }
  0xdc   :  { %895 = vmatpush.msrb.mxu3 %v2940_v16 }
  0xde   :  { %2630 = vmatmul.msk.f32.gmra.mxu1 %vm99_vm0, %v2943_v17 }
  0xdf   :  { %2621 = vmatmul.msk.f32.gmra.mxu0 %vm99_vm0, %v2928_v7 }
  0xe6   :  { %2631 = vmatmul.msk.f32.gmra.mxu1 %vm99_vm0, %v2967_v28 }
  0xe7   :  { %2622 = vmatmul.msk.f32.gmra.mxu0 %vm99_vm0, %v2943_v17 }
  0xee   :  { %2632 = vmatmul.msk.f32.gmra.mxu1 %vm99_vm0, %v2980_v39 }
  0xef   :  { %2623 = vmatmul.msk.f32.gmra.mxu0 %vm99_vm0, %v2967_v28 }
  0xf6   :  { %2633 = vmatmul.msk.f32.gmra.mxu1 %vm99_vm0, %v2989_v53 }
  0xf7   :  { %2624 = vmatmul.msk.f32.gmra.mxu0 %vm99_vm0, %v2980_v39 }
  0xfb   :  { %v247_v49 = vpop.f32.mrf.mxu1 }
  0xff   :  { %2625 = vmatmul.msk.f32.gmra.mxu0 %vm99_vm0, %v2989_v53 }
 0x103   :  { %v251_v50 = vpop.f32.mrf.mxu1 }
 0x104   :  { %v150_v56 = vpop.f32.mrf.mxu0  ;;  %v305_v60 = vpop.f32.mrf.mxu2 }
 0x106   :  { %v367_v4 = vpop.f32.mrf.mxu3 }
 0x10b   :  { %v255_v5 = vpop.f32.mrf.mxu1 }
 0x10c   :  { %v158_v7 = vpop.f32.mrf.mxu0  ;;  %v310_v8 = vpop.f32.mrf.mxu2 }
 0x10d   :  { %v252_v9 = vadd.f32 %v251_v50, %v158_v7 }
 0x10e   :  { %v373_v10 = vpop.f32.mrf.mxu3 }
 0x10f   :  { %v311_v11 = vadd.f32 %v310_v8, %v252_v9 }
 0x111   :  { %v3067_v12 = vadd.f32 %v373_v10, %v311_v11 }
 0x113   :  { %v259_v13 = vpop.f32.mrf.mxu1 }
 0x114   :  { %v166_v14 = vpop.f32.mrf.mxu0  ;;  %v315_v15 = vpop.f32.mrf.mxu2 }
 0x115   :  { %v256_v17 = vadd.f32 %v255_v5, %v166_v14 }
 0x116   :  { %v379_v19 = vpop.f32.mrf.mxu3 }
 0x117   :  { %v316_v20 = vadd.f32 %v315_v15, %v256_v17 }
 0x119   :  { %v3069_v21 = vadd.f32 %v379_v19, %v316_v20  ;;  %v248_v19 = vadd.f32 %v247_v49, %v150_v56 }
 0x11b   :  { %v263_v22 = vpop.f32.mrf.mxu1 }
 0x11c   :  { %v174_v24 = vpop.f32.mrf.mxu0  ;;  %v320_v25 = vpop.f32.mrf.mxu2 }
 0x11d   :  { %v260_v26 = vadd.f32 %v259_v13, %v174_v24  ;;  %v306_v24 = vadd.f32 %v305_v60, %v248_v19 }
 0x11e   :  { %v385_v28 = vpop.f32.mrf.mxu3 }
 0x11f   :  { %v321_v29 = vadd.f32 %v320_v25, %v260_v26 }
 0x121   :  { %v386_v30 = vadd.f32 %v385_v28, %v321_v29 }
 0x123   :  { %v267_v31 = vpop.f32.mrf.mxu1 }
 0x124   :  { %v182_v32 = vpop.f32.mrf.mxu0  ;;  %v325_v33 = vpop.f32.mrf.mxu2 }
 0x125   :  { %v264_v37 = vadd.f32 %v263_v22, %v182_v32 }
 0x126   :  { %v391_v39 = vpop.f32.mrf.mxu3 }
 0x127   :  { %v326_v42 = vadd.f32 %v325_v33, %v264_v37 }
 0x129   :  { %v392_v44 = vadd.f32 %v391_v39, %v326_v42 }
 0x12b   :  { %v271_v47 = vpop.f32.mrf.mxu1 }
 0x12c   :  { %v190_v48 = vpop.f32.mrf.mxu0  ;;  %v330_v51 = vpop.f32.mrf.mxu2 }
 0x12d   :  { %v268_v52 = vadd.f32 %v267_v31, %v190_v48  ;;  %v368_v31 = vadd.f32 %v367_v4, %v306_v24 }
 0x12e   :  { %v397_v53 = vpop.f32.mrf.mxu3 }
 0x12f   :  { %v331_v54 = vadd.f32 %v330_v51, %v268_v52 }
 0x131   :  { %v398_v57 = vadd.f32 %v397_v53, %v331_v54 }
 0x133   :  { %v275_v58 = vpop.f32.mrf.mxu1 }
 0x134   :  { %v198_v61 = vpop.f32.mrf.mxu0  ;;  %v335_v62 = vpop.f32.mrf.mxu2 }
 0x135   :  { %v272_v63 = vadd.f32 %v271_v47, %v198_v61 }
 0x136   :  { %v403_v1 = vpop.f32.mrf.mxu3 }
 0x137   :  { %v336_v2 = vadd.f32 %v335_v62, %v272_v63 }
 0x139   :  { %v3071_v3 = vadd.f32 %v403_v1, %v336_v2 }
 0x13b   :  { %v495_v50 = vpop.f32.mrf.mxu1 }
 0x13c   :  { %v206_v5 = vpop.f32.mrf.mxu0  ;;  %v340_v7 = vpop.f32.mrf.mxu2 }
 0x13d   :  { %v276_v8 = vadd.f32 %v275_v58, %v206_v5 }
 0x13e   :  { %v409_v9 = vpop.f32.mrf.mxu3 }
 0x13f   :  { %v341_v10 = vadd.f32 %v340_v7, %v276_v8 }
 0x141   :  { %v3073_v11 = vadd.f32 %v409_v9, %v341_v10 }
 0x143   :  { %v3075_v13 = vpop.f32.mrf.mxu1 }
 0x144   :  { %v442_v14 = vpop.f32.mrf.mxu0  ;;  %v571_v15 = vpop.f32.mrf.mxu2 }
 0x145   :  { %v443_v32 = vadd.f32 %v442_v14, %v368_v31 }
 0x146   :  { %v612_v17 = vpop.f32.mrf.mxu3 }
 0x147   :  { %v613_v25 = vadd.f32 %v612_v17, %v571_v15  ;;  %v496_v48 = vadd.f32 %v495_v50, %v443_v32 }
 0x14b   :  { %v3079_v26 = vpop.f32.mrf.mxu1 }
 0x14c   :  { %v3077_v20 = vpop.f32.mrf.mxu0  ;;  %v642_v22 = vpop.f32.mrf.mxu2 }
 0x14d   :  { %v643_v29 = vadd.f32 %v642_v22, %v613_v25 }
 0x14e   :  { %v669_v28 = vpop.f32.mrf.mxu3 }
 0x14f   :  { %v670_v33 = vadd.f32 %v669_v28, %v643_v29 }
 0x153   :  { %v507_v49 = vpop.f32.mrf.mxu1 }
 0x154   :  { %v3081_v37 = vpop.f32.mrf.mxu0 }
 0x155   :  { %v702_v39 = vpop.f32.mrf.mxu2 }
 0x156   :  { %v703_v42 = vadd.f32 %v702_v39, %v670_v33  ;;  %v727_v47 = vpop.f32.mrf.mxu3 }
 0x158   :  { %v728_v51 = vadd.f32 %v727_v47, %v703_v42 }
 0x15a   :  { %v730_v56 = vadd.f32 %v728_v51, %v496_v48 }
 0x15b   :  { %v511_v58 = vpop.f32.mrf.mxu1 }
 0x15c   :  { %v2634_v52 = vmul.f32 -1.442695, %v730_v56  ;;  %v454_v53 = vpop.f32.mrf.mxu0 }
 0x15d   :  { %v455_v60 = vadd.f32 %v454_v53, %v386_v30 }
 0x15e   :  { %2654 = vpow2.f32 %v2634_v52 }
 0x15f   :  { %v3083_v54 = vadd.f32 %v507_v49, %v455_v60 }
 0x163   :  { %v515_v5 = vpop.f32.mrf.mxu1 }
 0x164   :  { %v2655_v61 = vpop.eup %2654  ;;  %v458_v62 = vpop.f32.mrf.mxu0 }
 0x165   :  { %v734_v4 = vadd.f32 1.0, %v2655_v61  ;;  %v459_v63 = vadd.f32 %v458_v62, %v392_v44 }
 0x167   :  { %2656 = vrcp.f32 %v734_v4  ;;  %v3085_v1 = vadd.f32 %v511_v58, %v459_v63  ;;  %v746_v30 = vand.u32 2147483648, %v734_v4  ;;  %v744_v44 = vand.u32 2147483647, %v734_v4 }
 0x168   :  { %2658 = vtanh.f32 %v730_v56  ;;  %vm740_vm13 = vweird.f32 %v734_v4 }
 0x169   :  { %v747_v19 = vor.u32 1.1754944e-38, %v746_v30  ;;  %vm745_vm15 = vcmp.eq.f32.partialorder %v744_v44, 8.507059e+37 }
 0x16b   :  { %v519_v28 = vpop.f32.mrf.mxu1 }
 0x16c   :  { %v462_v50 = vpop.f32.mrf.mxu0 }
 0x16d   :  { %v2657_v2 = vpop.eup %2656  ;;  %v463_v7 = vadd.f32 %v462_v50, %v398_v57 }
 0x16e   :  { %v736_v8 = vmul.f32 %v2657_v2, %v734_v4  ;;  %vm741_vm11 = vweird.f32 %v2657_v2  ;;  %v2659_v25 = vpop.eup %2658 }
 0x16f   :  { %v3087_v9 = vadd.f32 %v515_v5, %v463_v7  ;;  %vm742_vm14 = vmor %vm740_vm13, %vm741_vm11  ;;  %v447_v7 = vadd.f32 %v3077_v20, %v3067_v12 }
 0x170   :  { %v737_v10 = vsub.f32 1.0, %v736_v8 }
 0x171   :  { %v500_v44 = vadd.f32 %v3075_v13, %v447_v7 }
 0x172   :  { %v738_v14 = vmul.f32 %v2657_v2, %v737_v10 }
 0x174   :  { %v739_v17 = vadd.f32 %v2657_v2, %v738_v14  ;;  %v466_v57 = vpop.f32.mrf.mxu0 }
 0x175   :  { %v467_v22 = vadd.f32 %v466_v57, %v3071_v3 }
 0x176   :  { %v743_v24 = vsel %vm742_vm14, %v2657_v2, %v739_v17 }
 0x177   :  { %v748_v45 = vsel %vm745_vm15, %v747_v19, %v743_v24  ;;  %v3096_v29 = vadd.f32 %v519_v28, %v467_v22 }
 0x178   :  { %v751_v31 = vsel %vm3091_vm12, %v2659_v25, %v748_v45 }
 0x179   :  { %754 = vrot.lane.b32.xlu2 %v751_v31, %s2775_s2  ;;  %v752_v39 = vmul.f32 0.0, %v751_v31 }
 0x1d3   :  { %v755_v32 = vpop.permute.xlu2 %754 }
 0x1d4   :  { %v757_v33 = vmul.f32 %v755_v32, %v751_v31 }
 0x1d6   :  { %759 = vrot.lane.b32.xlu0 %v757_v33, %s2776_s3 }
 0x248   :  { %v760_v3 = vpop.permute.xlu0 %759 }
 0x249   :  { %v3102_v42 = vadd.f32 %v760_v3, %v752_v39 }
 0x24b   :  { %2660 = vtanh.f32 %v3102_v42 }
 0x251   :  { %v2661_v47 = vpop.eup %2660 }
 0x252   :  { %765 = vrot.lane.b32.xlu1 %v2661_v47, %s2775_s2 }
 0x2c4   :  { %v766_v48 = vpop.permute.xlu1 %765 }
 0x2c5   :  { %v768_v51 = vmul.f32 %v766_v48, %v751_v31 }
 0x2c7   :  { %772 = vrot.lane.b32.xlu2 %v768_v51, %s2776_s3 }
 0x321   :  { %v773_v49 = vpop.permute.xlu2 %772 }
 0x322   :  { %v774_v56 = vsel %vm99_vm0, %v773_v49, 0 }
 0x323   :  { %v796_v52 = vand.u32 4294901760, %v774_v56 }
 0x325   :  { %v797_v53 = vsub.f32 %v774_v56, %v796_v52  ;;  %842 = vmatmul.f32.vlgmr.msra.gmra.mxu3 %v796_v52 }
 0x326   :  { %949 = vmatpush.msra.mxu3 %v2850_v34 }
 0x327   :  { %v798_v60 = vand.u32 4294901760, %v797_v53 }
 0x328   :  { %951 = vmatpush.msra.mxu3 %v2867_v40 }
 0x329   :  { %v799_v58 = vsub.f32 %v797_v53, %v798_v60 }
 0x32a   :  { %953 = vmatpush.msra.mxu3 %v2897_v55 }
 0x32b   :  { %v800_v61 = vand.u32 4294901760, %v799_v58 }
 0x32c   :  { %955 = vmatpush.msra.mxu3 %v2940_v16 }
 0x32d   :  { %801 = vmatmul.f32.vlgmr.msra.gmra.mxu2 %v800_v61  ;;  %899 = vmatmul.f32.vlgmr.msrb.gmra.mxu3 %v798_v60 }
 0x32e   :  { %918 = vmatpush.msra.mxu2 %v2857_v36  ;;  %1053 = vmatpush.msrb.mxu3 %v2861_v38 }
 0x330   :  { %922 = vmatpush.msra.mxu2 %v2874_v43  ;;  %1059 = vmatpush.msrb.mxu3 %v2880_v46 }
 0x332   :  { %926 = vmatpush.msra.mxu2 %v2918_v0  ;;  %1065 = vmatpush.msrb.mxu3 %v2924_v6 }
 0x334   :  { %930 = vmatpush.msra.mxu2 %v2956_v23  ;;  %1071 = vmatpush.msrb.mxu3 %v2963_v27 }
 0x335   :  { %872 = vmatmul.f32.vlgmr.msrb.gmra.mxu2 %v797_v53  ;;  %957 = vmatmul.f32.vlgmr.msra.gmra.mxu3 %v796_v52 }
 0x336   :  { %1020 = vmatpush.msrb.mxu2 %v2850_v34  ;;  %1120 = vmatpush.msra.mxu3 %v2850_v34 }
 0x338   :  { %1022 = vmatpush.msrb.mxu2 %v2867_v40  ;;  %1122 = vmatpush.msra.mxu3 %v2867_v40 }
 0x33a   :  { %1024 = vmatpush.msrb.mxu2 %v2897_v55  ;;  %1124 = vmatpush.msra.mxu3 %v2897_v55 }
 0x33c   :  { %1026 = vmatpush.msrb.mxu2 %v2940_v16  ;;  %1126 = vmatpush.msra.mxu3 %v2940_v16 }
 0x33d   :  { %932 = vmatmul.f32.vlgmr.msra.gmra.mxu2 %v796_v52 }
 0x33e   :  { %1091 = vmatpush.msra.mxu2 %v2854_v35 }
 0x340   :  { %1094 = vmatpush.msra.mxu2 %v2871_v41 }
 0x342   :  { %1097 = vmatpush.msra.mxu2 %v2905_v59 }
 0x344   :  { %1100 = vmatpush.msra.mxu2 %v2947_v18 }
 0x3a8   :  { %v843_v4 = vpop.f32.mrf.mxu3 }
 0x3b0   :  { %v802_v62 = vpop.f32.mrf.mxu2  ;;  %v900_v63 = vpop.f32.mrf.mxu3 }
 0x3b1   :  { %v844_v5 = vadd.f32 %v843_v4, %v802_v62 }
 0x3b8   :  { %v873_v2 = vpop.f32.mrf.mxu2  ;;  %v958_v14 = vpop.f32.mrf.mxu3 }
 0x3b9   :  { %v874_v50 = vadd.f32 %v873_v2, %v844_v5 }
 0x3bb   :  { %v901_v8 = vadd.f32 %v900_v63, %v874_v50 }
 0x3c0   :  { %v933_v10 = vpop.f32.mrf.mxu2 }
 0x3c1   :  { %v934_v30 = vadd.f32 %v933_v10, %v901_v8  ;;  %v3170_v8 = vpop.f32.mrf.mxu0  ;;  %v3172_v10 = vpop.f32.mrf.mxu1 }
 0x3c3   :  { %v959_v17 = vadd.f32 %v958_v14, %v934_v30 }
 0x3c5   :  { %v961_v57 = vadd.f32 %v959_v17, %v500_v44 }
 0x3c7   :  { %v2635_v19 = vmul.f32 -1.442695, %v961_v57 }
 0x3c9   :  { %2662 = vpow2.f32 %v2635_v19 }
 0x3cf   :  { %v2663_v22 = vpop.eup %2662 }
 0x3d0   :  { %v965_v24 = vadd.f32 1.0, %v2663_v22 }
 0x3d2   :  { %2664 = vrcp.f32 %v965_v24  ;;  %v977_v31 = vand.u32 2147483648, %v965_v24  ;;  %v975_v12 = vand.u32 2147483647, %v965_v24  ;;  %vm971_vm2 = vweird.f32 %v965_v24 }
 0x3d3   :  { %2666 = vtanh.f32 %v961_v57  ;;  %v451_v57 = vadd.f32 %v3081_v37, %v3069_v21 }
 0x3d4   :  { %v978_v33 = vor.u32 1.1754944e-38, %v977_v31  ;;  %vm976_vm4 = vcmp.eq.f32.partialorder %v975_v12, 8.507059e+37 }
 0x3d8   :  { %v2665_v25 = vpop.eup %2664 }
 0x3d9   :  { %v967_v28 = vmul.f32 %v2665_v25, %v965_v24  ;;  %vm972_vm1 = vweird.f32 %v2665_v25  ;;  %v2667_v39 = vpop.eup %2666 }
 0x3da   :  { %vm973_vm3 = vmor %vm971_vm2, %vm972_vm1 }
 0x3db   :  { %v968_v45 = vsub.f32 1.0, %v967_v28  ;;  %v504_v28 = vadd.f32 %v3079_v26, %v451_v57 }
 0x3dd   :  { %v969_v32 = vmul.f32 %v2665_v25, %v968_v45 }
 0x3df   :  { %v970_v20 = vadd.f32 %v2665_v25, %v969_v32 }
 0x3e1   :  { %v974_v13 = vsel %vm973_vm3, %v2665_v25, %v970_v20 }
 0x3e2   :  { %v979_v3 = vsel %vm976_vm4, %v978_v33, %v974_v13 }
 0x3e3   :  { %v982_v47 = vsel %vm3091_vm12, %v2667_v39, %v979_v3 }
 0x3e4   :  { %985 = vrot.lane.b32.xlu0 %v982_v47, %s2775_s2  ;;  %v983_v49 = vmul.f32 %v982_v47, %v3102_v42 }
 0x456   :  { %v986_v48 = vpop.permute.xlu0 %985 }
 0x457   :  { %v988_v51 = vmul.f32 %v986_v48, %v982_v47 }
 0x459   :  { %990 = vrot.lane.b32.xlu1 %v988_v51, %s2776_s3 }
 0x4cb   :  { %v991_v56 = vpop.permute.xlu1 %990 }
 0x4cc   :  { %v3140_v52 = vadd.f32 %v991_v56, %v983_v49 }
 0x4ce   :  { %2668 = vtanh.f32 %v3140_v52 }
 0x4d4   :  { %v2669_v53 = vpop.eup %2668 }
 0x4d5   :  { %996 = vrot.lane.b32.xlu2 %v2669_v53, %s2775_s2 }
 0x52f   :  { %v997_v60 = vpop.permute.xlu2 %996 }
 0x530   :  { %v999_v58 = vmul.f32 %v997_v60, %v982_v47 }
 0x532   :  { %1003 = vrot.lane.b32.xlu0 %v999_v58, %s2776_s3 }
 0x5a4   :  { %v1004_v61 = vpop.permute.xlu0 %1003 }
 0x5a5   :  { %v1005_v4 = vsel %vm99_vm0, %v1004_v61, 0 }
 0x5a6   :  { %v1027_v62 = vand.u32 4294901760, %v1005_v4 }
 0x5a8   :  { %v1028_v63 = vsub.f32 %v1005_v4, %v1027_v62  ;;  %1073 = vmatmul.f32.vlgmr.msrb.gmra.mxu3 %v1027_v62  ;;  %1163 = vmatmul.f32.vlgmr.msra.gmra.mxu0 %v1027_v62 }
 0x5a9   :  { %1188 = vmatmul.f32.vlgmr.msra.gmra.mxu1 %v1027_v62  ;;  %1284 = vmatpush.msrb.mxu3 %v2861_v38 }
 0x5aa   :  { %v1029_v42 = vand.u32 4294901760, %v1028_v63  ;;  %1515 = vmatpush.msra.mxu1 %v2861_v38  ;;  %1482 = vmatpush.msra.mxu0 %v2850_v34 }
 0x5ab   :  { %1290 = vmatpush.msrb.mxu3 %v2880_v46 }
 0x5ac   :  { %v1030_v2 = vsub.f32 %v1028_v63, %v1029_v42  ;;  %1521 = vmatpush.msra.mxu1 %v2880_v46  ;;  %1484 = vmatpush.msra.mxu0 %v2867_v40 }
 0x5ad   :  { %1296 = vmatpush.msrb.mxu3 %v2924_v6 }
 0x5ae   :  { %v1031_v5 = vand.u32 4294901760, %v1030_v2  ;;  %1527 = vmatpush.msra.mxu1 %v2924_v6  ;;  %1486 = vmatpush.msra.mxu0 %v2897_v55 }
 0x5af   :  { %1302 = vmatpush.msrb.mxu3 %v2963_v27 }
 0x5b0   :  { %1032 = vmatmul.f32.vlgmr.msrb.gmra.mxu2 %v1031_v5  ;;  %1130 = vmatmul.f32.vlgmr.msra.gmra.mxu3 %v1029_v42 }
 0x5b1   :  { %1251 = vmatpush.msrb.mxu2 %v2850_v34  ;;  %1411 = vmatpush.msra.mxu3 %v2850_v34 }
 0x5b2   :  { %1533 = vmatpush.msra.mxu1 %v2963_v27  ;;  %1488 = vmatpush.msra.mxu0 %v2940_v16 }
 0x5b3   :  { %1253 = vmatpush.msrb.mxu2 %v2867_v40  ;;  %1413 = vmatpush.msra.mxu3 %v2867_v40 }
 0x5b5   :  { %1255 = vmatpush.msrb.mxu2 %v2897_v55  ;;  %1415 = vmatpush.msra.mxu3 %v2897_v55 }
 0x5b7   :  { %1257 = vmatpush.msrb.mxu2 %v2940_v16  ;;  %1417 = vmatpush.msra.mxu3 %v2940_v16 }
 0x5b8   :  { %1103 = vmatmul.f32.vlgmr.msra.gmra.mxu2 %v1028_v63 }
 0x5b9   :  { %1380 = vmatpush.msra.mxu2 %v2857_v36 }
 0x5bb   :  { %1384 = vmatpush.msra.mxu2 %v2874_v43 }
 0x5bd   :  { %1388 = vmatpush.msra.mxu2 %v2918_v0 }
 0x5bf   :  { %1392 = vmatpush.msra.mxu2 %v2956_v23 }
 0x625   :  { %v1164_v22 = vpop.f32.mrf.mxu0 }
 0x626   :  { %v1189_v25 = vpop.f32.mrf.mxu1 }
 0x62b   :  { %v1074_v50 = vpop.f32.mrf.mxu3 }
 0x633   :  { %v1033_v7 = vpop.f32.mrf.mxu2  ;;  %v1131_v17 = vpop.f32.mrf.mxu3 }
 0x634   :  { %v1075_v30 = vadd.f32 %v1074_v50, %v1033_v7 }
 0x63b   :  { %v1104_v14 = vpop.f32.mrf.mxu2 }
 0x63c   :  { %v1105_v44 = vadd.f32 %v1104_v14, %v1075_v30 }
 0x63e   :  { %v1132_v19 = vadd.f32 %v1131_v17, %v1105_v44 }
 0x640   :  { %v1165_v24 = vadd.f32 %v1164_v22, %v1132_v19 }
 0x642   :  { %v1190_v45 = vadd.f32 %v1189_v25, %v1165_v24 }
 0x644   :  { %v1192_v31 = vadd.f32 %v1190_v45, %v504_v28 }
 0x646   :  { %v2636_v32 = vmul.f32 -1.442695, %v1192_v31 }
 0x648   :  { %2670 = vpow2.f32 %v2636_v32 }
 0x64e   :  { %v2671_v12 = vpop.eup %2670 }
 0x64f   :  { %v1196_v20 = vadd.f32 1.0, %v2671_v12 }
 0x651   :  { %2672 = vrcp.f32 %v1196_v20  ;;  %v1208_v3 = vand.u32 2147483648, %v1196_v20  ;;  %v1206_v21 = vand.u32 2147483647, %v1196_v20  ;;  %vm1202_vm6 = vweird.f32 %v1196_v20 }
 0x652   :  { %2674 = vtanh.f32 %v1192_v31 }
 0x653   :  { %v1209_v48 = vor.u32 1.1754944e-38, %v1208_v3  ;;  %vm1207_vm8 = vcmp.eq.f32.partialorder %v1206_v21, 8.507059e+37 }
 0x657   :  { %v2673_v33 = vpop.eup %2672 }
 0x658   :  { %v1198_v13 = vmul.f32 %v2673_v33, %v1196_v20  ;;  %vm1203_vm5 = vweird.f32 %v2673_v33  ;;  %v2675_v51 = vpop.eup %2674 }
 0x659   :  { %vm1204_vm7 = vmor %vm1202_vm6, %vm1203_vm5 }
 0x65a   :  { %v1199_v39 = vsub.f32 1.0, %v1198_v13 }
 0x65c   :  { %v1200_v47 = vmul.f32 %v2673_v33, %v1199_v39 }
 0x65e   :  { %v1201_v37 = vadd.f32 %v2673_v33, %v1200_v47 }
 0x660   :  { %v1205_v26 = vsel %vm1204_vm7, %v2673_v33, %v1201_v37 }
 0x661   :  { %v1210_v49 = vsel %vm1207_vm8, %v1209_v48, %v1205_v26 }
 0x662   :  { %v1213_v56 = vsel %vm3091_vm12, %v2675_v51, %v1210_v49 }
 0x663   :  { %1216 = vrot.lane.b32.xlu1 %v1213_v56, %s2775_s2  ;;  %v1214_v58 = vmul.f32 %v1213_v56, %v3140_v52 }
 0x6d5   :  { %v1217_v53 = vpop.permute.xlu1 %1216 }
 0x6d6   :  { %v1219_v60 = vmul.f32 %v1217_v53, %v1213_v56 }
 0x6d8   :  { %1221 = vrot.lane.b32.xlu2 %v1219_v60, %s2776_s3 }
 0x732   :  { %v1222_v61 = vpop.permute.xlu2 %1221 }
 0x733   :  { %v3182_v4 = vadd.f32 %v1222_v61, %v1214_v58 }
 0x735   :  { %2676 = vtanh.f32 %v3182_v4 }
 0x73b   :  { %v2677_v62 = vpop.eup %2676 }
 0x73c   :  { %1227 = vrot.lane.b32.xlu0 %v2677_v62, %s2775_s2 }
 0x7ae   :  { %v1228_v63 = vpop.permute.xlu0 %1227 }
 0x7af   :  { %v1230_v42 = vmul.f32 %v1228_v63, %v1213_v56 }
 0x7b1   :  { %1234 = vrot.lane.b32.xlu1 %v1230_v42, %s2776_s3 }
 0x823   :  { %v1235_v2 = vpop.permute.xlu1 %1234 }
 0x824   :  { %v1236_v5 = vsel %vm99_vm0, %v1235_v2, 0 }
 0x825   :  { %v1258_v50 = vand.u32 4294901760, %v1236_v5 }
 0x827   :  { %v1259_v7 = vsub.f32 %v1236_v5, %v1258_v50  ;;  %1304 = vmatmul.f32.vlgmr.msrb.gmra.mxu3 %v1258_v50 }
 0x828   :  { %1582 = vmatpush.msrb.mxu3 %v2850_v34 }
 0x829   :  { %v1260_v52 = vand.u32 4294901760, %v1259_v7  ;;  %1334 = vmatmul.f32.vlgmr.msrb.gmra.mxu0 %v1259_v7 }
 0x82a   :  { %1584 = vmatpush.msrb.mxu3 %v2867_v40  ;;  %1611 = vmatpush.msrb.mxu0 %v2857_v36 }
 0x82b   :  { %v1261_v30 = vsub.f32 %v1259_v7, %v1260_v52  ;;  %1361 = vmatmul.f32.vlgmr.msrb.gmra.mxu1 %v1260_v52 }
 0x82c   :  { %1586 = vmatpush.msrb.mxu3 %v2897_v55  ;;  %1642 = vmatpush.msrb.mxu1 %v2850_v34 }
 0x82d   :  { %v1262_v14 = vand.u32 4294901760, %v1261_v30  ;;  %1615 = vmatpush.msrb.mxu0 %v2874_v43 }
 0x82e   :  { %1588 = vmatpush.msrb.mxu3 %v2940_v16  ;;  %1644 = vmatpush.msrb.mxu1 %v2867_v40 }
 0x82f   :  { %1263 = vmatmul.f32.vlgmr.msrb.gmra.mxu2 %v1262_v14  ;;  %1419 = vmatmul.f32.vlgmr.msra.gmra.mxu3 %v1258_v50 }
 0x830   :  { %1553 = vmatpush.msrb.mxu2 %v2854_v35  ;;  %1646 = vmatpush.msrb.mxu1 %v2897_v55 }
 0x831   :  { %1619 = vmatpush.msrb.mxu0 %v2918_v0  ;;  %1746 = vmatpush.msra.mxu3 %v2861_v38 }
 0x832   :  { %1556 = vmatpush.msrb.mxu2 %v2871_v41  ;;  %1648 = vmatpush.msrb.mxu1 %v2940_v16 }
 0x833   :  { %1623 = vmatpush.msrb.mxu0 %v2956_v23  ;;  %1752 = vmatpush.msra.mxu3 %v2880_v46 }
 0x834   :  { %1559 = vmatpush.msrb.mxu2 %v2905_v59 }
 0x835   :  { %1758 = vmatpush.msra.mxu3 %v2924_v6 }
 0x836   :  { %1562 = vmatpush.msrb.mxu2 %v2947_v18 }
 0x837   :  { %1394 = vmatmul.f32.vlgmr.msra.gmra.mxu2 %v1258_v50  ;;  %1764 = vmatpush.msra.mxu3 %v2963_v27 }
 0x838   :  { %1713 = vmatpush.msra.mxu2 %v2850_v34 }
 0x83a   :  { %1715 = vmatpush.msra.mxu2 %v2867_v40 }
 0x83c   :  { %1717 = vmatpush.msra.mxu2 %v2897_v55 }
 0x83e   :  { %1719 = vmatpush.msra.mxu2 %v2940_v16 }
 0x8a6   :  { %v1335_v19 = vpop.f32.mrf.mxu0 }
 0x8a8   :  { %v1362_v24 = vpop.f32.mrf.mxu1 }
 0x8aa   :  { %v1305_v44 = vpop.f32.mrf.mxu3 }
 0x8b2   :  { %v1264_v17 = vpop.f32.mrf.mxu2  ;;  %v1420_v31 = vpop.f32.mrf.mxu3 }
 0x8b3   :  { %v1306_v57 = vadd.f32 %v1305_v44, %v1264_v17 }
 0x8b5   :  { %v1336_v22 = vadd.f32 %v1335_v19, %v1306_v57 }
 0x8b7   :  { %v1363_v25 = vadd.f32 %v1362_v24, %v1336_v22 }
 0x8ba   :  { %v1395_v28 = vpop.f32.mrf.mxu2 }
 0x8bb   :  { %v1396_v45 = vadd.f32 %v1395_v28, %v1363_v25 }
 0x8bd   :  { %v1421_v32 = vadd.f32 %v1420_v31, %v1396_v45 }
 0x8bf   :  { %v1423_v12 = vadd.f32 %v1421_v32, %v3083_v54 }
 0x8c1   :  { %v2637_v20 = vmul.f32 -1.442695, %v1423_v12 }
 0x8c3   :  { %2678 = vpow2.f32 %v2637_v20 }
 0x8c9   :  { %v2679_v33 = vpop.eup %2678 }
 0x8ca   :  { %v1427_v13 = vadd.f32 1.0, %v2679_v33 }
 0x8cc   :  { %2680 = vrcp.f32 %v1427_v13  ;;  %v1439_v21 = vand.u32 2147483648, %v1427_v13  ;;  %v1437_v48 = vand.u32 2147483647, %v1427_v13  ;;  %vm1433_vm10 = vweird.f32 %v1427_v13 }
 0x8cd   :  { %2682 = vtanh.f32 %v1423_v12 }
 0x8ce   :  { %v1440_v51 = vor.u32 1.1754944e-38, %v1439_v21  ;;  %vm1438_vm13 = vcmp.eq.f32.partialorder %v1437_v48, 8.507059e+37 }
 0x8d2   :  { %v2681_v39 = vpop.eup %2680 }
 0x8d3   :  { %v1429_v3 = vmul.f32 %v2681_v39, %v1427_v13  ;;  %vm1434_vm9 = vweird.f32 %v2681_v39  ;;  %v2683_v54 = vpop.eup %2682 }
 0x8d4   :  { %vm1435_vm11 = vmor %vm1433_vm10, %vm1434_vm9 }
 0x8d5   :  { %v1430_v47 = vsub.f32 1.0, %v1429_v3 }
 0x8d7   :  { %v1431_v37 = vmul.f32 %v2681_v39, %v1430_v47 }
 0x8d9   :  { %v1432_v26 = vadd.f32 %v2681_v39, %v1431_v37 }
 0x8db   :  { %v1436_v49 = vsel %vm1435_vm11, %v2681_v39, %v1432_v26 }
 0x8dc   :  { %v1441_v56 = vsel %vm1438_vm13, %v1440_v51, %v1436_v49 }
 0x8dd   :  { %v1444_v53 = vsel %vm3091_vm12, %v2683_v54, %v1441_v56 }
 0x8de   :  { %1447 = vrot.lane.b32.xlu2 %v1444_v53, %s2775_s2  ;;  %v1445_v61 = vmul.f32 %v1444_v53, %v3182_v4 }
 0x938   :  { %v1448_v60 = vpop.permute.xlu2 %1447 }
 0x939   :  { %v1450_v58 = vmul.f32 %v1448_v60, %v1444_v53 }
 0x93b   :  { %1452 = vrot.lane.b32.xlu0 %v1450_v58, %s2776_s3 }
 0x9ad   :  { %v1453_v62 = vpop.permute.xlu0 %1452 }
 0x9ae   :  { %v3218_v63 = vadd.f32 %v1453_v62, %v1445_v61 }
 0x9b0   :  { %2684 = vtanh.f32 %v3218_v63 }
 0x9b6   :  { %v2685_v42 = vpop.eup %2684 }
 0x9b7   :  { %1458 = vrot.lane.b32.xlu1 %v2685_v42, %s2775_s2 }
 0xa29   :  { %v1459_v2 = vpop.permute.xlu1 %1458 }
 0xa2a   :  { %v1461_v5 = vmul.f32 %v1459_v2, %v1444_v53 }
 0xa2c   :  { %1465 = vrot.lane.b32.xlu2 %v1461_v5, %s2776_s3 }
 0xa86   :  { %v1466_v50 = vpop.permute.xlu2 %1465 }
 0xa87   :  { %v1467_v7 = vsel %vm99_vm0, %v1466_v50, 0 }
 0xa88   :  { %v1489_v52 = vand.u32 4294901760, %v1467_v7 }
 0xa8a   :  { %v1490_v30 = vsub.f32 %v1467_v7, %v1489_v52  ;;  %1535 = vmatmul.f32.vlgmr.msra.gmra.mxu1 %v1489_v52 }
 0xa8b   :  { %1813 = vmatpush.msra.mxu1 %v2850_v34 }
 0xa8c   :  { %v1491_v4 = vand.u32 4294901760, %v1490_v30  ;;  %1565 = vmatmul.f32.vlgmr.msrb.gmra.mxu2 %v1490_v30 }
 0xa8d   :  { %1815 = vmatpush.msra.mxu1 %v2867_v40  ;;  %1842 = vmatpush.msrb.mxu2 %v2857_v36 }
 0xa8e   :  { %v1492_v14 = vsub.f32 %v1490_v30, %v1491_v4  ;;  %1592 = vmatmul.f32.vlgmr.msrb.gmra.mxu3 %v1491_v4 }
 0xa8f   :  { %1817 = vmatpush.msra.mxu1 %v2897_v55  ;;  %1873 = vmatpush.msrb.mxu3 %v2850_v34 }
 0xa90   :  { %v1493_v44 = vand.u32 4294901760, %v1492_v14  ;;  %1846 = vmatpush.msrb.mxu2 %v2874_v43 }
 0xa91   :  { %1819 = vmatpush.msra.mxu1 %v2940_v16  ;;  %1875 = vmatpush.msrb.mxu3 %v2867_v40 }
 0xa92   :  { %1494 = vmatmul.f32.vlgmr.msra.gmra.mxu0 %v1493_v44  ;;  %1650 = vmatmul.f32.vlgmr.msrb.gmra.mxu1 %v1489_v52 }
 0xa93   :  { %1784 = vmatpush.msra.mxu0 %v2854_v35  ;;  %1877 = vmatpush.msrb.mxu3 %v2897_v55 }
 0xa94   :  { %1850 = vmatpush.msrb.mxu2 %v2918_v0  ;;  %1977 = vmatpush.msrb.mxu1 %v2861_v38 }
 0xa95   :  { %1787 = vmatpush.msra.mxu0 %v2871_v41  ;;  %1879 = vmatpush.msrb.mxu3 %v2940_v16 }
 0xa96   :  { %1854 = vmatpush.msrb.mxu2 %v2956_v23  ;;  %1983 = vmatpush.msrb.mxu1 %v2880_v46 }
 0xa97   :  { %1790 = vmatpush.msra.mxu0 %v2905_v59 }
 0xa98   :  { %1989 = vmatpush.msrb.mxu1 %v2924_v6 }
 0xa99   :  { %1793 = vmatpush.msra.mxu0 %v2947_v18 }
 0xa9a   :  { %1625 = vmatmul.f32.vlgmr.msrb.gmra.mxu0 %v1489_v52  ;;  %1995 = vmatpush.msrb.mxu1 %v2963_v27 }
 0xa9b   :  { %1944 = vmatpush.msrb.mxu0 %v2850_v34 }
 0xa9d   :  { %1946 = vmatpush.msrb.mxu0 %v2867_v40 }
 0xa9f   :  { %1948 = vmatpush.msrb.mxu0 %v2897_v55 }
 0xaa1   :  { %1950 = vmatpush.msrb.mxu0 %v2940_v16 }
 0xb07   :  { %v1536_v17 = vpop.f32.mrf.mxu1 }
 0xb0f   :  { %v1495_v57 = vpop.f32.mrf.mxu0  ;;  %v1566_v22 = vpop.f32.mrf.mxu2 }
 0xb10   :  { %v1537_v19 = vadd.f32 %v1536_v17, %v1495_v57  ;;  %v1651_v32 = vpop.f32.mrf.mxu1 }
 0xb11   :  { %v1593_v25 = vpop.f32.mrf.mxu3 }
 0xb12   :  { %v1567_v24 = vadd.f32 %v1566_v22, %v1537_v19 }
 0xb14   :  { %v1594_v28 = vadd.f32 %v1593_v25, %v1567_v24 }
 0xb17   :  { %v1626_v45 = vpop.f32.mrf.mxu0 }
 0xb18   :  { %v1627_v31 = vadd.f32 %v1626_v45, %v1594_v28 }
 0xb1a   :  { %v1652_v12 = vadd.f32 %v1651_v32, %v1627_v31 }
 0xb1c   :  { %v1654_v20 = vadd.f32 %v1652_v12, %v3085_v1 }
 0xb1e   :  { %v2638_v33 = vmul.f32 -1.442695, %v1654_v20 }
 0xb20   :  { %2686 = vpow2.f32 %v2638_v33 }
 0xb26   :  { %v2687_v13 = vpop.eup %2686 }
 0xb27   :  { %v1658_v39 = vadd.f32 1.0, %v2687_v13 }
 0xb29   :  { %2688 = vrcp.f32 %v1658_v39  ;;  %v1670_v37 = vand.u32 2147483648, %v1658_v39  ;;  %v1668_v26 = vand.u32 2147483647, %v1658_v39  ;;  %vm1664_vm15 = vweird.f32 %v1658_v39 }
 0xb2a   :  { %2690 = vtanh.f32 %v1654_v20 }
 0xb2b   :  { %v1671_v49 = vor.u32 1.1754944e-38, %v1670_v37  ;;  %vm1669_vm2 = vcmp.eq.f32.partialorder %v1668_v26, 8.507059e+37 }
 0xb2f   :  { %v2689_v3 = vpop.eup %2688 }
 0xb30   :  { %v1660_v47 = vmul.f32 %v2689_v3, %v1658_v39  ;;  %vm1665_vm14 = vweird.f32 %v2689_v3  ;;  %v2691_v1 = vpop.eup %2690 }
 0xb31   :  { %vm1666_vm1 = vmor %vm1664_vm15, %vm1665_vm14 }
 0xb32   :  { %v1661_v21 = vsub.f32 1.0, %v1660_v47 }
 0xb34   :  { %v1662_v48 = vmul.f32 %v2689_v3, %v1661_v21 }
 0xb36   :  { %v1663_v51 = vadd.f32 %v2689_v3, %v1662_v48 }
 0xb38   :  { %v1667_v54 = vsel %vm1666_vm1, %v2689_v3, %v1663_v51 }
 0xb39   :  { %v1672_v56 = vsel %vm1669_vm2, %v1671_v49, %v1667_v54 }
 0xb3a   :  { %v1675_v53 = vsel %vm3091_vm12, %v2691_v1, %v1672_v56 }
 0xb3b   :  { %1678 = vrot.lane.b32.xlu0 %v1675_v53, %s2775_s2  ;;  %v1676_v61 = vmul.f32 %v1675_v53, %v3218_v63 }
 0xbad   :  { %v1679_v60 = vpop.permute.xlu0 %1678 }
 0xbae   :  { %v1681_v58 = vmul.f32 %v1679_v60, %v1675_v53 }
 0xbb0   :  { %1683 = vrot.lane.b32.xlu1 %v1681_v58, %s2776_s3 }
 0xc22   :  { %v1684_v62 = vpop.permute.xlu1 %1683 }
 0xc23   :  { %v3254_v42 = vadd.f32 %v1684_v62, %v1676_v61 }
 0xc25   :  { %2692 = vtanh.f32 %v3254_v42 }
 0xc2b   :  { %v2693_v2 = vpop.eup %2692 }
 0xc2c   :  { %1689 = vrot.lane.b32.xlu2 %v2693_v2, %s2775_s2 }
 0xc86   :  { %v1690_v5 = vpop.permute.xlu2 %1689 }
 0xc87   :  { %v1692_v50 = vmul.f32 %v1690_v5, %v1675_v53 }
 0xc89   :  { %1696 = vrot.lane.b32.xlu0 %v1692_v50, %s2776_s3 }
 0xcfb   :  { %v1697_v7 = vpop.permute.xlu0 %1696 }
 0xcfc   :  { %v1698_v52 = vsel %vm99_vm0, %v1697_v7, 0 }
 0xcfd   :  { %v1720_v30 = vand.u32 4294901760, %v1698_v52 }
 0xcff   :  { %v1721_v4 = vsub.f32 %v1698_v52, %v1720_v30  ;;  %1766 = vmatmul.f32.vlgmr.msra.gmra.mxu3 %v1720_v30 }
 0xd00   :  { %2044 = vmatpush.msra.mxu3 %v2850_v34 }
 0xd01   :  { %v1722_v63 = vand.u32 4294901760, %v1721_v4  ;;  %1796 = vmatmul.f32.vlgmr.msra.gmra.mxu0 %v1721_v4 }
 0xd02   :  { %2046 = vmatpush.msra.mxu3 %v2867_v40  ;;  %2073 = vmatpush.msra.mxu0 %v2857_v36 }
 0xd03   :  { %v1723_v14 = vsub.f32 %v1721_v4, %v1722_v63  ;;  %1823 = vmatmul.f32.vlgmr.msra.gmra.mxu1 %v1722_v63 }
 0xd04   :  { %2048 = vmatpush.msra.mxu3 %v2897_v55  ;;  %2104 = vmatpush.msra.mxu1 %v2850_v34 }
 0xd05   :  { %v1724_v44 = vand.u32 4294901760, %v1723_v14  ;;  %2077 = vmatpush.msra.mxu0 %v2874_v43 }
 0xd06   :  { %2050 = vmatpush.msra.mxu3 %v2940_v16  ;;  %2106 = vmatpush.msra.mxu1 %v2867_v40 }
 0xd07   :  { %1725 = vmatmul.f32.vlgmr.msra.gmra.mxu2 %v1724_v44  ;;  %1881 = vmatmul.f32.vlgmr.msrb.gmra.mxu3 %v1720_v30 }
 0xd08   :  { %2015 = vmatpush.msra.mxu2 %v2854_v35  ;;  %2108 = vmatpush.msra.mxu1 %v2897_v55 }
 0xd09   :  { %2081 = vmatpush.msra.mxu0 %v2918_v0  ;;  %2208 = vmatpush.msrb.mxu3 %v2861_v38 }
 0xd0a   :  { %2018 = vmatpush.msra.mxu2 %v2871_v41  ;;  %2110 = vmatpush.msra.mxu1 %v2940_v16 }
 0xd0b   :  { %2085 = vmatpush.msra.mxu0 %v2956_v23  ;;  %2214 = vmatpush.msrb.mxu3 %v2880_v46 }
 0xd0c   :  { %2021 = vmatpush.msra.mxu2 %v2905_v59 }
 0xd0d   :  { %2220 = vmatpush.msrb.mxu3 %v2924_v6 }
 0xd0e   :  { %2024 = vmatpush.msra.mxu2 %v2947_v18 }
 0xd0f   :  { %1856 = vmatmul.f32.vlgmr.msrb.gmra.mxu2 %v1720_v30  ;;  %2226 = vmatpush.msrb.mxu3 %v2963_v27 }
 0xd10   :  { %2175 = vmatpush.msrb.mxu2 %v2850_v34 }
 0xd12   :  { %2177 = vmatpush.msrb.mxu2 %v2867_v40 }
 0xd14   :  { %2179 = vmatpush.msrb.mxu2 %v2897_v55 }
 0xd16   :  { %2181 = vmatpush.msrb.mxu2 %v2940_v16 }
 0xd7e   :  { %v1797_v57 = vpop.f32.mrf.mxu0 }
 0xd80   :  { %v1824_v22 = vpop.f32.mrf.mxu1 }
 0xd82   :  { %v1767_v38 = vpop.f32.mrf.mxu3 }
 0xd8a   :  { %v1726_v17 = vpop.f32.mrf.mxu2  ;;  %v1882_v28 = vpop.f32.mrf.mxu3 }
 0xd8b   :  { %v1768_v46 = vadd.f32 %v1767_v38, %v1726_v17 }
 0xd8d   :  { %v1798_v19 = vadd.f32 %v1797_v57, %v1768_v46 }
 0xd8f   :  { %v1825_v6 = vadd.f32 %v1824_v22, %v1798_v19 }
 0xd92   :  { %v1857_v24 = vpop.f32.mrf.mxu2 }
 0xd93   :  { %v1858_v25 = vadd.f32 %v1857_v24, %v1825_v6 }
 0xd95   :  { %v1883_v45 = vadd.f32 %v1882_v28, %v1858_v25 }
 0xd97   :  { %v1885_v27 = vadd.f32 %v1883_v45, %v3087_v9 }
 0xd99   :  { %v2639_v31 = vmul.f32 -1.442695, %v1885_v27 }
 0xd9b   :  { %2694 = vpow2.f32 %v2639_v31 }
 0xda1   :  { %v2695_v32 = vpop.eup %2694 }
 0xda2   :  { %v1889_v12 = vadd.f32 1.0, %v2695_v32 }
 0xda4   :  { %2696 = vrcp.f32 %v1889_v12  ;;  %v1901_v39 = vand.u32 2147483648, %v1889_v12  ;;  %v1899_v47 = vand.u32 2147483647, %v1889_v12  ;;  %vm1895_vm4 = vweird.f32 %v1889_v12 }
 0xda5   :  { %2698 = vtanh.f32 %v1885_v27 }
 0xda6   :  { %v1902_v37 = vor.u32 1.1754944e-38, %v1901_v39  ;;  %vm1900_vm6 = vcmp.eq.f32.partialorder %v1899_v47, 8.507059e+37 }
 0xdaa   :  { %v2697_v20 = vpop.eup %2696 }
 0xdab   :  { %v1891_v33 = vmul.f32 %v2697_v20, %v1889_v12  ;;  %vm1896_vm3 = vweird.f32 %v2697_v20  ;;  %v2699_v9 = vpop.eup %2698 }
 0xdac   :  { %vm1897_vm5 = vmor %vm1895_vm4, %vm1896_vm3 }
 0xdad   :  { %v1892_v13 = vsub.f32 1.0, %v1891_v33 }
 0xdaf   :  { %v1893_v3 = vmul.f32 %v2697_v20, %v1892_v13 }
 0xdb1   :  { %v1894_v21 = vadd.f32 %v2697_v20, %v1893_v3 }
 0xdb3   :  { %v1898_v48 = vsel %vm1897_vm5, %v2697_v20, %v1894_v21 }
 0xdb4   :  { %v1903_v26 = vsel %vm1900_vm6, %v1902_v37, %v1898_v48 }
 0xdb5   :  { %v1906_v51 = vsel %vm3091_vm12, %v2699_v9, %v1903_v26 }
 0xdb6   :  { %1909 = vrot.lane.b32.xlu1 %v1906_v51, %s2775_s2  ;;  %v1907_v1 = vmul.f32 %v1906_v51, %v3254_v42 }
 0xe28   :  { %v1910_v49 = vpop.permute.xlu1 %1909 }
 0xe29   :  { %v1912_v54 = vmul.f32 %v1910_v49, %v1906_v51 }
 0xe2b   :  { %1914 = vrot.lane.b32.xlu2 %v1912_v54, %s2776_s3 }
 0xe85   :  { %v1915_v56 = vpop.permute.xlu2 %1914 }
 0xe86   :  { %v3290_v53 = vadd.f32 %v1915_v56, %v1907_v1  ;;  %v471_v56 = vadd.f32 %v3170_v8, %v3073_v11 }
 0xe88   :  { %2700 = vtanh.f32 %v3290_v53 }
 0xe8e   :  { %v2701_v60 = vpop.eup %2700 }
 0xe8f   :  { %1920 = vrot.lane.b32.xlu0 %v2701_v60, %s2775_s2 }
 0xf01   :  { %v1921_v58 = vpop.permute.xlu0 %1920 }
 0xf02   :  { %v1923_v61 = vmul.f32 %v1921_v58, %v1906_v51 }
 0xf04   :  { %1927 = vrot.lane.b32.xlu1 %v1923_v61, %s2776_s3 }
 0xf76   :  { %v1928_v62 = vpop.permute.xlu1 %1927 }
 0xf77   :  { %v1929_v2 = vsel %vm99_vm0, %v1928_v62, 0  ;;  %v524_v62 = vadd.f32 %v3172_v10, %v471_v56 }
 0xf78   :  { %v1951_v5 = vand.u32 4294901760, %v1929_v2 }
 0xf7a   :  { %v1952_v50 = vsub.f32 %v1929_v2, %v1951_v5  ;;  %1997 = vmatmul.f32.vlgmr.msrb.gmra.mxu1 %v1951_v5 }
 0xf7b   :  { %2275 = vmatpush.msrb.mxu1 %v2850_v34 }
 0xf7c   :  { %v1953_v42 = vand.u32 4294901760, %v1952_v50  ;;  %2027 = vmatmul.f32.vlgmr.msra.gmra.mxu2 %v1952_v50 }
 0xf7d   :  { %2277 = vmatpush.msrb.mxu1 %v2867_v40  ;;  %2304 = vmatpush.msra.mxu2 %v2857_v36 }
 0xf7e   :  { %v1954_v7 = vsub.f32 %v1952_v50, %v1953_v42  ;;  %2054 = vmatmul.f32.vlgmr.msra.gmra.mxu3 %v1953_v42 }
 0xf7f   :  { %2279 = vmatpush.msrb.mxu1 %v2897_v55  ;;  %2335 = vmatpush.msra.mxu3 %v2850_v34 }
 0xf80   :  { %v1955_v52 = vand.u32 4294901760, %v1954_v7  ;;  %2308 = vmatpush.msra.mxu2 %v2874_v43 }
 0xf81   :  { %2281 = vmatpush.msrb.mxu1 %v2940_v16  ;;  %2337 = vmatpush.msra.mxu3 %v2867_v40 }
 0xf82   :  { %1956 = vmatmul.f32.vlgmr.msrb.gmra.mxu0 %v1955_v52  ;;  %2112 = vmatmul.f32.vlgmr.msra.gmra.mxu1 %v1951_v5 }
 0xf83   :  { %2246 = vmatpush.msrb.mxu0 %v2854_v35  ;;  %2339 = vmatpush.msra.mxu3 %v2897_v55 }
 0xf84   :  { %2312 = vmatpush.msra.mxu2 %v2918_v0 }
 0xf85   :  { %2249 = vmatpush.msrb.mxu0 %v2871_v41  ;;  %2341 = vmatpush.msra.mxu3 %v2940_v16 }
 0xf86   :  { %2316 = vmatpush.msra.mxu2 %v2956_v23 }
 0xf87   :  { %2252 = vmatpush.msrb.mxu0 %v2905_v59 }
 0xf89   :  { %2255 = vmatpush.msrb.mxu0 %v2947_v18 }
 0xf8a   :  { %2087 = vmatmul.f32.vlgmr.msra.gmra.mxu0 %v1951_v5 }
 0xff7   :  { %v1998_v34 = vpop.f32.mrf.mxu1 }
 0xfff   :  { %v1957_v36 = vpop.f32.mrf.mxu0  ;;  %v2028_v43 = vpop.f32.mrf.mxu2 }
0x1000   :  { %v1999_v40 = vadd.f32 %v1998_v34, %v1957_v36  ;;  %v2113_v63 = vpop.f32.mrf.mxu1 }
0x1001   :  { %v2055_v30 = vpop.f32.mrf.mxu3 }
0x1002   :  { %v2029_v35 = vadd.f32 %v2028_v43, %v1999_v40 }
0x1004   :  { %v2056_v55 = vadd.f32 %v2055_v30, %v2029_v35 }
0x1007   :  { %v2088_v4 = vpop.f32.mrf.mxu0 }
0x1008   :  { %v2089_v0 = vadd.f32 %v2088_v4, %v2056_v55 }
0x100a   :  { %v2114_v41 = vadd.f32 %v2113_v63, %v2089_v0 }
0x100c   :  { %v2116_v16 = vadd.f32 %v2114_v41, %v3096_v29 }
0x100e   :  { %v2640_v14 = vmul.f32 -1.442695, %v2116_v16 }
0x1010   :  { %2702 = vpow2.f32 %v2640_v14 }
0x1016   :  { %v2703_v23 = vpop.eup %2702 }
0x1017   :  { %v2120_v59 = vadd.f32 1.0, %v2703_v23 }
0x1019   :  { %2704 = vrcp.f32 %v2120_v59  ;;  %v2132_v17 = vand.u32 2147483648, %v2120_v59  ;;  %v2130_v57 = vand.u32 2147483647, %v2120_v59  ;;  %vm2126_vm8 = vweird.f32 %v2120_v59 }
0x101a   :  { %2706 = vtanh.f32 %v2116_v16 }
0x101b   :  { %v2133_v22 = vor.u32 1.1754944e-38, %v2132_v17  ;;  %vm2131_vm10 = vcmp.eq.f32.partialorder %v2130_v57, 8.507059e+37 }
0x101f   :  { %v2705_v18 = vpop.eup %2704 }
0x1020   :  { %v2122_v44 = vmul.f32 %v2705_v18, %v2120_v59  ;;  %vm2127_vm7 = vweird.f32 %v2705_v18  ;;  %v2707_v29 = vpop.eup %2706  ;;  %v2389_v59 = vld [vmem:[#allocation3 + $0x18] sm:$0xff] }
0x1021   :  { %vm2128_vm9 = vmor %vm2126_vm8, %vm2127_vm7 }
0x1022   :  { %v2123_v38 = vsub.f32 1.0, %v2122_v44  ;;  %v2411_v44 = vand.u32 4294901760, %v2389_v59 }
0x1024   :  { %v2124_v46 = vmul.f32 %v2705_v18, %v2123_v38  ;;  %v2441_v17 = vsub.f32 %v2389_v59, %v2411_v44  ;;  %2412 = vmatpush.msra.mxu0 %v2411_v44 }
0x1026   :  { %v2125_v19 = vadd.f32 %v2705_v18, %v2124_v46  ;;  %v2442_v46 = vand.u32 4294901760, %v2441_v17 }
0x1028   :  { %v2129_v6 = vsel %vm2128_vm9, %v2705_v18, %v2125_v19  ;;  %v2388_v18 = vld [vmem:[#allocation3 + $0x10] sm:$0xff]  ;;  %v2443_v19 = vsub.f32 %v2441_v17, %v2442_v46 }
0x1029   :  { %v2134_v24 = vsel %vm2131_vm10, %v2133_v22, %v2129_v6  ;;  %v2413_v38 = vand.u32 4294901760, %v2388_v18 }
0x102a   :  { %v2137_v25 = vsel %vm3091_vm12, %v2707_v29, %v2134_v24  ;;  %v2444_v6 = vand.u32 4294901760, %v2443_v19 }
0x102b   :  { %2140 = vrot.lane.b32.xlu2 %v2137_v25, %s2775_s2  ;;  %v2138_v27 = vmul.f32 %v2137_v25, %v3290_v53  ;;  %v2447_v15 = vsub.f32 %v2388_v18, %v2413_v38  ;;  %2414 = vmatpush.msra.mxu0 %v2413_v38 }
0x102c   :  { %2445 = vmatpush.msra.mxu1 %v2444_v6 }
0x102d   :  { %v2448_v57 = vand.u32 4294901760, %v2447_v15 }
0x102f   :  { %v2449_v22 = vsub.f32 %v2447_v15, %v2448_v57 }
0x1031   :  { %v2450_v29 = vand.u32 4294901760, %v2449_v22 }
0x1033   :  { %2451 = vmatpush.msra.mxu1 %v2450_v29 }
0x1085   :  { %v2141_v28 = vpop.permute.xlu2 %2140 }
0x1086   :  { %v2143_v45 = vmul.f32 %v2141_v28, %v2137_v25  ;;  %v2387_v28 = vld [vmem:[#allocation3 + $0x8] sm:$0xff] }
0x1088   :  { %2145 = vrot.lane.b32.xlu0 %v2143_v45, %s2776_s3  ;;  %v2415_v45 = vand.u32 4294901760, %v2387_v28 }
0x108a   :  { %2416 = vmatpush.msra.mxu0 %v2415_v45 }
0x10fa   :  { %v2146_v31 = vpop.permute.xlu0 %2145 }
0x10fb   :  { %v2148_v32 = vadd.f32 %v2146_v31, %v2138_v27  ;;  %v2386_v27 = vld [vmem:[#allocation3] sm:$0xff]  ;;  %v2453_v31 = vsub.f32 %v2387_v28, %v2415_v45 }
0x10fd   :  { %2708 = vtanh.f32 %v2148_v32 }
0x1103   :  { %v2709_v12 = vpop.eup %2708 }
0x1104   :  { %2151 = vrot.lane.b32.xlu1 %v2709_v12, %s2775_s2  ;;  %v2454_v12 = vand.u32 4294901760, %v2453_v31 }
0x1176   :  { %v2152_v20 = vpop.permute.xlu1 %2151 }
0x1177   :  { %v2154_v33 = vmul.f32 %v2152_v20, %v2137_v25 }
0x1179   :  { %2158 = vrot.lane.b32.xlu2 %v2154_v33, %s2776_s3  ;;  %v2455_v33 = vsub.f32 %v2453_v31, %v2454_v12 }
0x11d3   :  { %v2159_v13 = vpop.permute.xlu2 %2158 }
0x11d4   :  { %v2160_v39 = vsel %vm99_vm0, %v2159_v13, 0 }
0x11d5   :  { %v2182_v3 = vand.u32 4294901760, %v2160_v39 }
0x11d7   :  { %v2183_v47 = vsub.f32 %v2160_v39, %v2182_v3  ;;  %2228 = vmatmul.f32.vlgmr.msrb.gmra.mxu3 %v2182_v3  ;;  %v2456_v39 = vand.u32 4294901760, %v2455_v33 }
0x11d8   :  { %2512 = vmatpush.msrb.mxu3 %v2411_v44 }
0x11d9   :  { %v2184_v21 = vand.u32 4294901760, %v2183_v47  ;;  %2258 = vmatmul.f32.vlgmr.msrb.gmra.mxu0 %v2183_v47  ;;  %2457 = vmatpush.msra.mxu1 %v2456_v39 }
0x11da   :  { %2514 = vmatpush.msrb.mxu3 %v2413_v38 }
0x11db   :  { %v2185_v37 = vsub.f32 %v2183_v47, %v2184_v21  ;;  %2285 = vmatmul.f32.vlgmr.msrb.gmra.mxu1 %v2184_v21 }
0x11dc   :  { %2516 = vmatpush.msrb.mxu3 %v2415_v45 }
0x11dd   :  { %v2186_v48 = vand.u32 4294901760, %v2185_v37 }
0x11df   :  { %2187 = vmatmul.f32.vlgmr.msrb.gmra.mxu2 %v2186_v48  ;;  %2343 = vmatmul.f32.vlgmr.msra.gmra.mxu3 %v2182_v3 }
0x11e0   :  { %2483 = vmatpush.msrb.mxu2 %v2441_v17 }
0x11e2   :  { %2486 = vmatpush.msrb.mxu2 %v2447_v15 }
0x11e4   :  { %2489 = vmatpush.msrb.mxu2 %v2453_v31 }
0x11e7   :  { %2318 = vmatmul.f32.vlgmr.msra.gmra.mxu2 %v2182_v3 }
0x1256   :  { %v2259_v49 = vpop.f32.mrf.mxu0 }
0x1258   :  { %v2286_v1 = vpop.f32.mrf.mxu1 }
0x125a   :  { %v2229_v9 = vpop.f32.mrf.mxu3 }
0x1262   :  { %v2188_v26 = vpop.f32.mrf.mxu2  ;;  %v2344_v61 = vpop.f32.mrf.mxu3 }
0x1263   :  { %v2230_v51 = vadd.f32 %v2229_v9, %v2188_v26 }
0x1265   :  { %v2260_v54 = vadd.f32 %v2259_v49, %v2230_v51 }
0x1267   :  { %v2287_v53 = vadd.f32 %v2286_v1, %v2260_v54  ;;  %v2653_v54 = vld [vmem:[%s3341_s4] ss:$0 sm:$0xff] }
0x126a   :  { %v2319_v60 = vpop.f32.mrf.mxu2 }
0x126b   :  { %v2320_v58 = vadd.f32 %v2319_v60, %v2287_v53 }
0x126d   :  { %v2345_v2 = vadd.f32 %v2344_v61, %v2320_v58 }
0x126f   :  { %v2347_v5 = vadd.f32 %v2345_v2, %v524_v62 }
0x1271   :  { %v2641_v50 = vmul.f32 -1.442695, %v2347_v5 }
0x1273   :  { %2710 = vpow2.f32 %v2641_v50 }
0x1279   :  { %v2711_v42 = vpop.eup %2710 }
0x127a   :  { %v2351_v7 = vadd.f32 1.0, %v2711_v42 }
0x127c   :  { %2712 = vrcp.f32 %v2351_v7  ;;  %v2363_v40 = vand.u32 2147483648, %v2351_v7  ;;  %v2361_v11 = vand.u32 2147483647, %v2351_v7  ;;  %vm2357_vm13 = vweird.f32 %v2351_v7 }
0x127d   :  { %2714 = vtanh.f32 %v2347_v5 }
0x127e   :  { %v2364_v35 = vor.u32 1.1754944e-38, %v2363_v40  ;;  %vm2362_vm15 = vcmp.eq.f32.partialorder %v2361_v11, 8.507059e+37 }
0x1282   :  { %v2713_v52 = vpop.eup %2712 }
0x1283   :  { %v2353_v34 = vmul.f32 %v2713_v52, %v2351_v7  ;;  %vm2358_vm11 = vweird.f32 %v2713_v52  ;;  %v2715_v30 = vpop.eup %2714 }
0x1284   :  { %vm2359_vm14 = vmor %vm2357_vm13, %vm2358_vm11 }
0x1285   :  { %v2354_v36 = vsub.f32 1.0, %v2353_v34 }
0x1287   :  { %v2355_v43 = vmul.f32 %v2713_v52, %v2354_v36 }
0x1289   :  { %v2356_v8 = vadd.f32 %v2713_v52, %v2355_v43 }
0x128b   :  { %v2360_v10 = vsel %vm2359_vm14, %v2713_v52, %v2356_v8 }
0x128c   :  { %v2365_v55 = vsel %vm2362_vm15, %v2364_v35, %v2360_v10 }
0x128d   :  { %v2368_v4 = vsel %vm3091_vm12, %v2715_v30, %v2365_v55 }
0x128e   :  { %2371 = vrot.lane.b32.xlu0 %v2368_v4, %s2775_s2  ;;  %v2369_v41 = vmul.f32 %v2368_v4, %v2148_v32  ;;  %v2417_v32 = vand.u32 4294901760, %v2386_v27 }
0x1290   :  { %v2459_v20 = vsub.f32 %v2386_v27, %v2417_v32  ;;  %2518 = vmatpush.msrb.mxu3 %v2417_v32  ;;  %2418 = vmatpush.msra.mxu0 %v2417_v32 }
0x1292   :  { %v2460_v13 = vand.u32 4294901760, %v2459_v20  ;;  %2492 = vmatpush.msrb.mxu2 %v2459_v20  ;;  %2541 = vmatpush.msrb.mxu0 %v2442_v46 }
0x1294   :  { %v2461_v3 = vsub.f32 %v2459_v20, %v2460_v13  ;;  %2545 = vmatpush.msrb.mxu0 %v2448_v57 }
0x1296   :  { %v2462_v47 = vand.u32 4294901760, %v2461_v3  ;;  %2549 = vmatpush.msrb.mxu0 %v2454_v12 }
0x1298   :  { %2463 = vmatpush.msra.mxu1 %v2462_v47  ;;  %2553 = vmatpush.msrb.mxu0 %v2460_v13 }
0x129a   :  { %2572 = vmatpush.msrb.mxu1 %v2411_v44 }
0x129c   :  { %2574 = vmatpush.msrb.mxu1 %v2413_v38 }
0x129e   :  { %2576 = vmatpush.msrb.mxu1 %v2415_v45 }
0x12a0   :  { %2578 = vmatpush.msrb.mxu1 %v2417_v32 }
0x1300   :  { %v2372_v0 = vpop.permute.xlu0 %2371 }
0x1301   :  { %v2374_v63 = vmul.f32 %v2372_v0, %v2368_v4 }
0x1303   :  { %2376 = vrot.lane.b32.xlu1 %v2374_v63, %s2776_s3 }
0x1375   :  { %v2377_v16 = vpop.permute.xlu1 %2376 }
0x1376   :  { %v2379_v14 = vadd.f32 %v2377_v16, %v2369_v41 }
0x1378   :  { %2716 = vtanh.f32 %v2379_v14 }
0x137e   :  { %v2717_v23 = vpop.eup %2716 }
0x137f   :  { %2382 = vrot.lane.b32.xlu2 %v2717_v23, %s2775_s2 }
0x13d9   :  { %v2383_v24 = vpop.permute.xlu2 %2382 }
0x13da   :  { %v2385_v25 = vmul.f32 %v2383_v24, %v2368_v4 }
0x13dc   :  { %2395 = vrot.lane.b32.xlu0 %v2385_v25, %s2776_s3 }
0x144e   :  { %v2396_v21 = vpop.permute.xlu0 %2395 }
0x144f   :  { %v2397_v37 = vsel %vm99_vm0, %v2396_v21, 0 }
0x1450   :  { %v2419_v48 = vand.u32 4294901760, %v2397_v37 }
0x1452   :  { %v2420_v9 = vsub.f32 %v2397_v37, %v2419_v48  ;;  %2465 = vmatmul.f32.vlgmr.msra.gmra.mxu1 %v2419_v48 }
0x1454   :  { %v2421_v26 = vand.u32 4294901760, %v2420_v9  ;;  %2495 = vmatmul.f32.vlgmr.msrb.gmra.mxu2 %v2420_v9 }
0x1456   :  { %v2422_v51 = vsub.f32 %v2420_v9, %v2421_v26  ;;  %2522 = vmatmul.f32.vlgmr.msrb.gmra.mxu3 %v2421_v26 }
0x1458   :  { %v2423_v49 = vand.u32 4294901760, %v2422_v51 }
0x145a   :  { %2424 = vmatmul.f32.vlgmr.msra.gmra.mxu0 %v2423_v49  ;;  %2580 = vmatmul.f32.vlgmr.msrb.gmra.mxu1 %v2419_v48 }
0x1462   :  { %2555 = vmatmul.f32.vlgmr.msrb.gmra.mxu0 %v2419_v48 }
0x14cf   :  { %v2466_v1 = vpop.f32.mrf.mxu1 }
0x14d7   :  { %v2425_v56 = vpop.f32.mrf.mxu0  ;;  %v2496_v58 = vpop.f32.mrf.mxu2 }
0x14d8   :  { %v2426_v53 = vadd.f32 %v2653_v54, %v2425_v56  ;;  %v2581_v42 = vpop.f32.mrf.mxu1 }
0x14d9   :  { %v2523_v62 = vpop.f32.mrf.mxu3 }
0x14da   :  { %v2467_v60 = vadd.f32 %v2466_v1, %v2426_v53 }
0x14dc   :  { %v2497_v61 = vadd.f32 %v2496_v58, %v2467_v60 }
0x14de   :  { %v2524_v2 = vadd.f32 %v2523_v62, %v2497_v61 }
0x14df   :  { %v2556_v5 = vpop.f32.mrf.mxu0 }
0x14e0   :  { %v2557_v50 = vadd.f32 %v2556_v5, %v2524_v2 }
0x14e2   :  { %v2582_v7 = vadd.f32 %v2581_v42, %v2557_v50 }
0x14e4   :  { %2584 = vst [vmem:[#allocation6] sm:$0xff] %v2582_v7 }
0x14e5   :  { %2595 = dma.vmem_to_hbm [thread:$0]  %s2591_s7, 128, %s2593_s10, [#allocation5]  }
0x14e6   :  { %2768 = dma.done.wait [#allocation5], 128  }
0x14e7   :  { %2769 = vsyncadd [#allocation5], 4294967168 }
0x14e8   :  { %2600 = vsyncpa [#allocation4], 1 }
0x14e9   :  { %2601 = vsyncpa [#allocation5], 1 }

</bundles_post_ra>
